<compile_context>
chip_gen: v7x
topology: tpu7x:2x2x1
jax: 0.10.0
libtpu: 0.0.40
codegen_flags: <defaults>
</compile_context>

<pallas_src>
import functools

import jax
import jax.numpy as jnp
from jax.experimental import pallas as pl
from jax.experimental.pallas import tpu as pltpu


def _round_up(x, m):
    return (x + m - 1) // m * m


def _cdiv(a, b):
    return (a + b - 1) // b


@functools.lru_cache(maxsize=None)
def _vmem_capacity_bytes():
    """Best-effort VMEM capacity query; falls back to 128 MiB (v5e/v6e)."""
    try:
        info = pltpu.get_tpu_info()
        cap = getattr(info, "vmem_capacity_bytes", None)
        if cap:
            return int(cap)
    except Exception:
        pass
    return 128 * 1024 * 1024


def _select_tiles(M, K, N, x_bytes, w_bytes, out_bytes=4, tm_max=256):
    """Pick (tm, Mp, tn, vmem_limit) from the problem shape and VMEM capacity."""
    vmem_cap = _vmem_capacity_bytes()
    if vmem_cap <= 64 * 1024 * 1024:        # v7x-class: 64 MiB VMEM per TC
        vmem_limit = 40 * 1024 * 1024
    else:                                   # v5e / v6e: 128 MiB physical
        vmem_limit = 64 * 1024 * 1024
    pipe_budget = vmem_limit - 10 * 1024 * 1024   # headroom for internal scratch

    # ---- M tiling: balanced tiles (padding <= 7 rows/tile), tm % 8 == 0 -----
    n_mt = max(1, _cdiv(M, tm_max))
    tm = _round_up(_cdiv(M, n_mt), 8)
    Mp = _cdiv(M, tm) * tm

    # ---- N tiling: largest 128-aligned divisor of N fitting the VMEM budget -
    def pipe_bytes(tn_):
        return (2 * K * tn_ * w_bytes          # weight tile (double-buffered)
                + 2 * tm * tn_ * out_bytes     # output tile
                + 2 * tn_ * 4                  # bias tile
                + 2 * tm * K * x_bytes)        # activation tile

    if N % 128 != 0:
        tn = N                                 # full-extent (small / odd N)
    else:
        tn = 128
        c = min(8192, N)
        c -= c % 128
        while c >= 128:
            if N % c == 0 and pipe_bytes(c) <= pipe_budget:
                tn = c
                break
            c -= 128
        # keep >= 2 iterations on the parallel N axis (v7x megacore sharding)
        if N // tn < 2 and tn % 256 == 0:
            tn //= 2
    return tm, Mp, tn, vmem_limit


# --------------------------------------------------------------------------
# Pallas kernel 1: tiled (M, K) @ (K, N) + bias(N) -> (M, N), f32 accumulate.
#   Grid is (N outer "parallel", M inner "arbitrary") so the weight tile is
#   resident across M tiles.  K is never padded (full-extent block); only M is
#   padded (to a multiple of 8) and tiled; N is tiled lane-dense.
# --------------------------------------------------------------------------
def _linear_bias_kernel(x_ref, w_ref, b_ref, o_ref):
    acc = jnp.dot(x_ref[...], w_ref[...], preferred_element_type=jnp.float32)
    o_ref[...] = (acc + b_ref[...]).astype(o_ref.dtype)


def linear_pallas(x, w, b, *, compute_dtype=None):
    M, K = x.shape
    Kw, N = w.shape
    assert K == Kw and b.shape[-1] == N

    if compute_dtype is not None:
        x = x.astype(compute_dtype)
        w = w.astype(compute_dtype)

    tm, Mp, tn, vmem_limit = _select_tiles(
        M, K, N, x_bytes=x.dtype.itemsize, w_bytes=w.dtype.itemsize)

    if Mp != M:
        x = jnp.pad(x, ((0, Mp - M), (0, 0)))
    b2 = jnp.reshape(b, (1, N)).astype(jnp.float32)

    # N outer (parallel: megacore sharding + weight streamed once),
    # M inner (arbitrary: weight block index is constant -> stays resident).
    grid = (N // tn, Mp // tm)
    out = pl.pallas_call(
        _linear_bias_kernel,
        out_shape=jax.ShapeDtypeStruct((Mp, N), jnp.float32),
        grid_spec=pltpu.PrefetchScalarGridSpec(
            num_scalar_prefetch=0,
            grid=grid,
            in_specs=[
                pl.BlockSpec((tm, K), lambda j, i: (i, 0)),
                pl.BlockSpec((K, tn), lambda j, i: (0, j)),
                pl.BlockSpec((1, tn), lambda j, i: (0, j)),
            ],
            out_specs=pl.BlockSpec((tm, tn), lambda j, i: (i, j)),
        ),
        compiler_params=pltpu.CompilerParams(
            dimension_semantics=("parallel", "arbitrary"),
            vmem_limit_bytes=vmem_limit,
        ),
    )(x, w, b2)
    return out[:M] if Mp != M else out


# --------------------------------------------------------------------------
# Pallas kernel 2: fused rotation + contrastive heads — ONE dot.
#   Rows [0:B] of the stacked token block hold tok0, rows [B:2B] hold tok1;
#   the weight is the pre-concatenated (dim, 4+512) matrix.  Tiny M, single
#   VMEM block, no grid.
# --------------------------------------------------------------------------
def _heads_kernel(t_ref, w_ref, b_ref, o_ref):
    o_ref[...] = (
        jnp.dot(t_ref[...], w_ref[...], preferred_element_type=jnp.float32)
        + b_ref[...])


def heads_pallas(tok0, tok1, w_heads, b_heads):
    B = tok0.shape[0]
    toks = jnp.concatenate([tok0, tok1], axis=0)          # (2B, dim)
    Mp = _round_up(2 * B, 8)
    if Mp != 2 * B:
        toks = jnp.pad(toks, ((0, Mp - 2 * B), (0, 0)))
    vmem = pl.BlockSpec(memory_space=pltpu.MemorySpace.VMEM)
    out = pl.pallas_call(
        _heads_kernel,
        out_shape=jax.ShapeDtypeStruct((Mp, w_heads.shape[1]), jnp.float32),
        in_specs=[vmem, vmem, vmem],
        out_specs=vmem,
    )(toks, w_heads, b_heads)
    x_rot = out[:B, :4]
    x_con = out[B:2 * B, 4:]
    return x_rot, x_con


# --------------------------------------------------------------------------
# One-time weight preparation (outside the jitted forward).
# Composes the 4 kernel==stride ConvTranspose3d layers (no activation between
# them) into a single effective deconv:  W_eff (dim, in_ch, 32, 32, 32) and a
# position-dependent bias B_eff (in_ch, 32, 32, 32), packed into matmul layout
# (columns ordered (cout, kd, kh, kw)).  Also pre-concatenates the head
# weights into one (dim, 516) matrix.
# --------------------------------------------------------------------------
def prepare_params(params):
    (w0, b0, k0) = params["deconvs"][0]
    W = w0.astype(jnp.float32)
    Bias = jnp.broadcast_to(
        b0[:, None, None, None], (b0.shape[0], k0, k0, k0)).astype(jnp.float32)
    k_tot = k0
    for (w2, b2, k2) in params["deconvs"][1:]:
        C0, C2 = W.shape[0], w2.shape[1]
        kn = k_tot * k2
        Wn = jnp.einsum("ocijk,cdabg->odiajbkg", W, w2).reshape(C0, C2, kn, kn, kn)
        Bn = (jnp.einsum("cijk,cdabg->diajbkg", Bias, w2).reshape(C2, kn, kn, kn)
              + b2[:, None, None, None])
        W, Bias, k_tot = Wn, Bn, kn
    cout = W.shape[1]

    w_heads = jnp.concatenate([params["w_rot"], params["w_con"]], axis=1)
    b_heads = jnp.concatenate([params["b_rot"], params["b_con"]]).reshape(1, -1)

    return {
        "w_heads": w_heads.astype(jnp.float32),
        "b_heads": b_heads.astype(jnp.float32),
        # deconv path runs the MXU in bf16 (f32 accumulate + f32 bias)
        # TODO(synk): re-validate the bf16 cast of the composed weight at
        # production dim / trained weights; keep w_rec in f32 if error grows.
        "w_rec": W.reshape(W.shape[0], -1).astype(jnp.bfloat16),
        "b_rec": Bias.reshape(-1).astype(jnp.float32),
        "cout": cout,
        "k_total": k_tot,
    }


# --------------------------------------------------------------------------
# SSLHead forward (post-encoder), upsample='deconv'
# --------------------------------------------------------------------------
def ssl_head_forward(x_out, prep):
    """x_out: (B, dim, h, w, d) — last feature map from the encoder."""
    B, C, H, W, D = x_out.shape

    # Heads: tokens 0/1 of flatten(2,4).transpose(1,2) are spatial (0,0,0) and
    # (0,0,1); slice them straight from NCDHW so the head path does not depend
    # on the big channels-last transpose.
    tok0 = x_out[:, :, 0, 0, 0]
    tok1 = x_out[:, :, 0, 0, 1]
    x_rot, x_con = heads_pallas(tok0, tok1, prep["w_heads"], prep["b_heads"])

    # Merged deconv stack: one NCDHW -> channels-last transpose, one lane-dense
    # per-voxel matmul, one pixel-shuffle back to NCDHW.
    k = prep["k_total"]
    cout = prep["cout"]
    x_mat = jnp.transpose(x_out, (0, 2, 3, 4, 1)).reshape(B * H * W * D, C)
    y = linear_pallas(x_mat, prep["w_rec"], prep["b_rec"],
                      compute_dtype=jnp.bfloat16)
    # TODO(synk): if downstream tolerates bf16, emit bf16 from linear_pallas to
    # halve the pixel-shuffle HBM traffic (kept f32 to match nn.Module output).
    y = y.reshape(B, H, W, D, cout, k, k, k)
    y = jnp.transpose(y, (0, 4, 1, 5, 2, 6, 3, 7))
    x_rec = y.reshape(B, cout, H * k, W * k, D * k)
    return x_rot, x_con, x_rec


# --------------------------------------------------------------------------
# Deterministic parameter construction (synthetic init, no checkpoint load)
# --------------------------------------------------------------------------
def make_params(key, dim, in_channels):
    ks = jax.random.split(key, 12)
    scale = 0.02

    def nrm(k, shape):
        return (scale * jax.random.normal(k, shape)).astype(jnp.float32)

    params = {
        # Linear weights stored as (in_features, out_features)
        "w_rot": nrm(ks[0], (dim, 4)),
        "b_rot": nrm(ks[1], (4,)),
        "w_con": nrm(ks[2], (dim, 512)),
        "b_con": nrm(ks[3], (512,)),
    }
    # ConvTranspose3d stack: (dim -> dim/4, k=2), (dim/4 -> dim/16, k=4),
    #                        (dim/16 -> dim/32, k=2), (dim/32 -> in_ch, k=2)
    specs = [
        (dim, dim // 4, 2),
        (dim // 4, dim // 16, 4),
        (dim // 16, dim // 32, 2),
        (dim // 32, in_channels, 2),
    ]
    deconvs = []
    for i, (cin, cout, k) in enumerate(specs):
        w = nrm(ks[4 + 2 * i], (cin, cout, k, k, k))  # torch layout (Cin,Cout,kD,kH,kW)
        b = nrm(ks[5 + 2 * i], (cout,))
        deconvs.append((w, b, k))
    params["deconvs"] = deconvs
    return params


# --------------------------------------------------------------------------
# Pure-jnp reference (per-layer math, f32, no composition) for a sanity check
# --------------------------------------------------------------------------
def ssl_head_reference(x_out, params):
    B, C, H, W, D = x_out.shape
    x4 = jnp.transpose(x_out.reshape(B, C, H * W * D), (0, 2, 1))
    x_rot = x4[:, 0] @ params["w_rot"] + params["b_rot"]
    x_con = x4[:, 1] @ params["w_con"] + params["b_con"]
    x_rec = x_out
    for (w, bb, k) in params["deconvs"]:
        Bn, Cin, S1, S2, S3 = x_rec.shape
        Cout = w.shape[1]
        y = jnp.einsum("bcijk,cdxyz->bdixjykz", x_rec, w)
        y = y.reshape(Bn, Cout, S1 * k, S2 * k, S3 * k)
        x_rec = y + bb[None, :, None, None, None]
    return x_rot, x_con, x_rec


if __name__ == "__main__":
    # Small shapes: B=2, dim=64 (must be divisible by 32), encoder grid 2x2x2,
    # in_channels=1.  Final reconstruction: (2, 1, 64, 64, 64).
    B, DIM, IN_CH = 2, 64, 1
    H = W = D = 2

    key = jax.random.PRNGKey(0)
    k_x, k_p = jax.random.split(key)
    x_out = jax.random.normal(k_x, (B, DIM, H, W, D), dtype=jnp.float32)
    params = make_params(k_p, DIM, IN_CH)
    prep = prepare_params(params)          # one-time compose + pre-pack

    fwd = jax.jit(functools.partial(ssl_head_forward, prep=prep))
    x_rot, x_con, x_rec = fwd(x_out)
    jax.block_until_ready((x_rot, x_con, x_rec))

    # sanity check against the pure-jnp per-layer reference
    r_rot, r_con, r_rec = ssl_head_reference(x_out, params)
    assert x_rot.shape == (B, 4) and x_con.shape == (B, 512)
    assert x_rec.shape == (B, IN_CH, H * 32, W * 32, D * 32)
    assert jnp.allclose(x_rot, r_rot, atol=1e-4, rtol=1e-4)
    assert jnp.allclose(x_con, r_con, atol=1e-4, rtol=1e-4)
    # reconstruction path runs the MXU in bf16 -> relaxed (relative) tolerance
    rel_err = jnp.max(jnp.abs(x_rec - r_rec)) / (jnp.max(jnp.abs(r_rec)) + 1e-12)
    assert rel_err < 1e-2, float(rel_err)

    print("KERNEL_OK")
</pallas_src>

<mosaic_0001>
module attributes {stable_mosaic.version = 11 : i64} {
  func.func @_heads_kernel(%arg0: memref<8x64xf32, #tpu.memory_space<vmem>>, %arg1: memref<64x516xf32, #tpu.memory_space<vmem>>, %arg2: memref<1x516xf32, #tpu.memory_space<vmem>>, %arg3: memref<8x516xf32, #tpu.memory_space<vmem>>) attributes {dimension_semantics = [], scalar_prefetch = 0 : i64, scratch_operands = 0 : i64, tpu.core_type = #tpu.core_type<tc>} {
    %c0 = arith.constant 0 : index
    %c0_0 = arith.constant 0 : index
    %0 = vector.load %arg0[%c0, %c0_0] : memref<8x64xf32, #tpu.memory_space<vmem>>, vector<8x64xf32>
    %c0_1 = arith.constant 0 : index
    %c0_2 = arith.constant 0 : index
    %1 = vector.load %arg1[%c0_1, %c0_2] : memref<64x516xf32, #tpu.memory_space<vmem>>, vector<64x516xf32>
    %cst = arith.constant dense<0.000000e+00> : vector<8x516xf32>
    %2 = tpu.matmul %0, %1, %cst {dimension_numbers = #tpu.dot_dimension_numbers<[1], [0], [0], [1], [0, 0, 1, 1], [], []>} : vector<8x64xf32>, vector<64x516xf32>, vector<8x516xf32> -> vector<8x516xf32>
    %c0_3 = arith.constant 0 : index
    %c0_4 = arith.constant 0 : index
    %3 = vector.load %arg2[%c0_3, %c0_4] : memref<1x516xf32, #tpu.memory_space<vmem>>, vector<1x516xf32>
    %4 = vector.broadcast %3 : vector<1x516xf32> to vector<8x516xf32>
    %5 = arith.addf %2, %4 : vector<8x516xf32>
    %c0_5 = arith.constant 0 : index
    %c0_6 = arith.constant 0 : index
    %6 = vector.load %arg3[%c0_5, %c0_6] : memref<8x516xf32, #tpu.memory_space<vmem>>, vector<8x516xf32>
    tpu.vector_store %arg3[%c0_5, %c0_6], %5 {strides = array<i32>} : memref<8x516xf32, #tpu.memory_space<vmem>>, vector<8x516xf32>,
    return
  }
}

module attributes {stable_mosaic.version = 11 : i64} {
  func.func @_linear_bias_kernel(%arg0: i32, %arg1: i32, %arg2: memref<16x64xbf16, #tpu.memory_space<vmem>>, %arg3: memref<64x8192xbf16, #tpu.memory_space<vmem>>, %arg4: memref<1x8192xf32, #tpu.memory_space<vmem>>, %arg5: memref<16x8192xf32, #tpu.memory_space<vmem>>) attributes {dimension_semantics = [#tpu.dimension_semantics<parallel>, #tpu.dimension_semantics<arbitrary>], iteration_bounds = array<i64: 4, 1>, scalar_prefetch = 0 : i64, scratch_operands = 0 : i64, tpu.core_type = #tpu.core_type<tc>, window_params = [{transform_indices = @transform_0, window_bounds = array<i64: 16, 64>}, {transform_indices = @transform_1, window_bounds = array<i64: 64, 8192>}, {transform_indices = @transform_2, window_bounds = array<i64: 1, 8192>}, {transform_indices = @transform_3, window_bounds = array<i64: 16, 8192>}]} {
    %c0 = arith.constant 0 : index
    %c0_0 = arith.constant 0 : index
    %0 = vector.load %arg2[%c0, %c0_0] : memref<16x64xbf16, #tpu.memory_space<vmem>>, vector<16x64xbf16>
    %c0_1 = arith.constant 0 : index
    %c0_2 = arith.constant 0 : index
    %1 = vector.load %arg3[%c0_1, %c0_2] : memref<64x8192xbf16, #tpu.memory_space<vmem>>, vector<64x8192xbf16>
    %cst = arith.constant dense<0.000000e+00> : vector<16x8192xf32>
    %2 = tpu.matmul %0, %1, %cst {dimension_numbers = #tpu.dot_dimension_numbers<[1], [0], [0], [1], [0, 0, 1, 1], [], []>} : vector<16x64xbf16>, vector<64x8192xbf16>, vector<16x8192xf32> -> vector<16x8192xf32>
    %c0_3 = arith.constant 0 : index
    %c0_4 = arith.constant 0 : index
    %3 = vector.load %arg4[%c0_3, %c0_4] : memref<1x8192xf32, #tpu.memory_space<vmem>>, vector<1x8192xf32>
    %4 = vector.broadcast %3 : vector<1x8192xf32> to vector<16x8192xf32>
    %5 = arith.addf %2, %4 : vector<16x8192xf32>
    %c0_5 = arith.constant 0 : index
    %c0_6 = arith.constant 0 : index
    %6 = vector.load %arg5[%c0_5, %c0_6] : memref<16x8192xf32, #tpu.memory_space<vmem>>, vector<16x8192xf32>
    tpu.vector_store %arg5[%c0_5, %c0_6], %5 {strides = array<i32>} : memref<16x8192xf32, #tpu.memory_space<vmem>>, vector<16x8192xf32>,
    return
  }
  func.func @transform_0(%arg0: i32, %arg1: i32) -> (i32, i32) {
    %c0_i32 = arith.constant 0 : i32
    %c0_i32_0 = arith.constant 0 : i32
    return %arg1, %c0_i32 : i32, i32
  }
  func.func @transform_1(%arg0: i32, %arg1: i32) -> (i32, i32) {
    %c0_i32 = arith.constant 0 : i32
    %c0_i32_0 = arith.constant 0 : i32
    return %c0_i32, %arg0 : i32, i32
  }
  func.func @transform_2(%arg0: i32, %arg1: i32) -> (i32, i32) {
    %c0_i32 = arith.constant 0 : i32
    %c0_i32_0 = arith.constant 0 : i32
    return %c0_i32, %arg0 : i32, i32
  }
  func.func @transform_3(%arg0: i32, %arg1: i32) -> (i32, i32) {
    %c0_i32 = arith.constant 0 : i32
    return %arg1, %arg0 : i32, i32
  }
}

</mosaic_0001>

<bundles_post_ra>
// kernel: ssl_head_forward.2
= control target key start
LH: loop header
LB: loop body
LE: loop exit
PB: predicated region body
PF: predicated region fallthrough
CT: control target
= control target key end

     0   :  { %8 = vsyncpa [#allocation3], 0  ;;  %s541_s0 = inlined_call_operand.vmem [shape: f32[8,64], index: 0, kind: input, shape index: {}]   ;;  %s542_s1 = inlined_call_operand.hbm [shape: f32[64,516], index: 1, kind: input, shape index: {}]   ;;  %s543_s2 = inlined_call_operand.hbm [shape: f32[1,516], index: 2, kind: input, shape index: {}]   ;;  %s544_s3 = inlined_call_operand.vmem [shape: f32[8,516], index: 3, kind: output, shape index: {}]  }
   0x1   :  { %9 = vsyncpa [#allocation5], 0  ;;  %s466_s12 = smov [#allocation2]   ;;  %s418_s16 = scalar_lea.hbm %s542_s1, 5120 }
   0x2   :  { %s17_s13 = sshll.u32 %s466_s12, 4  ;;  %p419_p0 = scmp.ne.s32.totalorder %s542_s1, %s418_s16  ;;  %s18_s13 = int_to_ptr.vmem [resolvable:$true] %s17_s13 }
   0x3   :  { %p422_p1 = scmp.lt.u32.totalorder %s418_s16, %s542_s1 }
   0x5   :  { %p424_p2 = pnand %p422_p1, %p419_p0 }
   0x7   :  { %427 = shalt.err (!%p424_p2)
}
   0x8   :  { %s428_s21 = scalar_lea.vmem %s18_s13, 5120  ;;  %p433_p4 = scmp.lt.s32.totalorder %s18_s13, %s18_s13 }
   0x9   :  { %p429_p3 = scmp.ne.s32.totalorder %s18_s13, %s428_s21  ;;  %p434_p5 = scmp.lt.s32.totalorder %s428_s21, %s428_s21 }
   0xb   :  { %p435_p6 = por %p434_p5, %p433_p4 }
   0xd   :  { %p436_p7 = pnand %p435_p6, %p429_p3 }
   0xf   :  { %439 = shalt.err (!%p436_p7)
}
  0x10   :  { %s467_s22 = smov 640   ;;  %s468_s23 = smov 40  }
  0x11   :  { %23 = dma.hbm_to_vmem [thread:$0]  %s542_s1, 5120, %s18_s13, [#allocation3], %s467_s22, %s467_s22, %s468_s23  }
  0x12   :  { %s469_s26 = smov [#allocation4]   ;;  %s440_s30 = scalar_lea.hbm %s543_s2, 80 }
  0x13   :  { %s30_s27 = sshll.u32 %s469_s26, 4  ;;  %p441_p8 = scmp.ne.s32.totalorder %s543_s2, %s440_s30  ;;  %s31_s27 = int_to_ptr.vmem [resolvable:$true] %s30_s27 }
  0x14   :  { %p444_p9 = scmp.lt.u32.totalorder %s440_s30, %s543_s2 }
  0x16   :  { %p446_p10 = pnand %p444_p9, %p441_p8 }
  0x18   :  { %449 = shalt.err (!%p446_p10)
}
  0x19   :  { %s450_s8 = scalar_lea.vmem %s31_s27, 80  ;;  %s454_s1 = scalar_lea.vmem %s31_s27, 96 }
  0x1a   :  { %p451_p11 = scmp.ne.s32.totalorder %s31_s27, %s450_s8  ;;  %p455_p12 = scmp.lt.s32.totalorder %s31_s27, %s31_s27 }
  0x1b   :  { %p456_p13 = scmp.lt.s32.totalorder %s454_s1, %s450_s8 }
  0x1d   :  { %p457_p0 = por %p456_p13, %p455_p12 }
  0x1f   :  { %p458_p1 = pnand %p457_p0, %p451_p11 }
  0x21   :  { %461 = shalt.err (!%p458_p1)
}
  0x22   :  { %33 = dma.hbm_to_vmem [thread:$0]  %s543_s2, 80, %s31_s27, [#allocation5]  }
  0x23   :  { %462 = dma.done.wait [#allocation3], 5120  }
  0x24   :  { %463 = vsyncadd [#allocation3], 4294962176 }
  0x25   :  { %464 = dma.done.wait [#allocation5], 80  }
  0x26   :  { %465 = vsyncadd [#allocation5], 4294967216  ;;  %v470_v0 = vmov 0.0   ;;  %v42_v1 = vld [vmem:[#allocation2 + $0x8] sm:$0xff]  ;;  %v47_v2 = vld [vmem:[#allocation2 + $0x30] sm:$0xff]  ;;  %vm108_vm0 = vcmask 523264   ;;  %v83_v63 = vlaneseq }
  0x27   :  { %176 = vmatprep.mubr.f32.mxu0 %v470_v0  ;;  %247 = vmatprep.mubr.f32.mxu1 %v470_v0  ;;  %v41_v3 = vld [vmem:[#allocation2] sm:$0xff]  ;;  %v367_v4 = vpack.c.bf16 %v47_v2, %v42_v1  ;;  %v46_v5 = vld [vmem:[#allocation2 + $0x28] sm:$0xff]  ;;  %v52_v6 = vld [vmem:[#allocation2 + $0x58] sm:$0xff]  ;;  %v471_v52 = vmov 0.0|0.0   ;;  %vm472_vm1 = vmmov 0   ;;  %vm328_vm2 = vcmask 31744  }
  0x28   :  { %v57_v7 = vld [vmem:[#allocation2 + $0x80] sm:$0xff]  ;;  %v369_v8 = vpack.c.bf16 %v46_v5, %v41_v3  ;;  %v51_v10 = vld [vmem:[#allocation2 + $0x50] sm:$0xff]  ;;  %v56_v11 = vld [vmem:[#allocation2 + $0x78] sm:$0xff]  ;;  %v84_v1 = vshrl.u32 %v83_v63, 7 }
  0x29   :  { %v371_v9 = vpack.c.bf16 %v57_v7, %v52_v6  ;;  %v62_v12 = vld [vmem:[#allocation2 + $0xa8] sm:$0xff]  ;;  %368 = vmatprep.subr.bf16.mxu0 %v367_v4  ;;  %v67_v13 = vld [vmem:[#allocation2 + $0xd0] sm:$0xff]  ;;  %v373_v14 = vpack.c.bf16 %v56_v11, %v51_v10  ;;  %v61_v15 = vld [vmem:[#allocation2 + $0xa0] sm:$0xff] }
  0x2a   :  { %370 = vmatpush1.bf16.msra.mxu0 %v369_v8  ;;  %v66_v16 = vld [vmem:[#allocation2 + $0xc8] sm:$0xff]  ;;  %v375_v17 = vpack.c.bf16 %v67_v13, %v62_v12  ;;  %v72_v18 = vld [vmem:[#allocation2 + $0xf8] sm:$0xff]  ;;  %v49_v20 = vld [vmem:[#allocation2 + $0x40] sm:$0xff]  ;;  %v89_v3 = vsub.s32 1, %v84_v1  ;;  %v93_v6 = vsub.s32 2, %v84_v1  ;;  %v97_v7 = vsub.s32 3, %v84_v1 }
  0x2b   :  { %372 = vmatprep.subr.bf16.mxu0 %v371_v9  ;;  %v44_v19 = vld [vmem:[#allocation2 + $0x18] sm:$0xff]  ;;  %v77_v21 = vld [vmem:[#allocation2 + $0x120] sm:$0xff]  ;;  %v43_v23 = vld [vmem:[#allocation2 + $0x10] sm:$0xff]  ;;  %v377_v27 = vpack.c.bf16 %v66_v16, %v61_v15 }
  0x2c   :  { %v383_v22 = vpack.c.bf16 %v49_v20, %v44_v19  ;;  %v48_v24 = vld [vmem:[#allocation2 + $0x38] sm:$0xff]  ;;  %v54_v26 = vld [vmem:[#allocation2 + $0x68] sm:$0xff]  ;;  %v59_v28 = vld [vmem:[#allocation2 + $0x90] sm:$0xff]  ;;  %v379_v31 = vpack.c.bf16 %v77_v21, %v72_v18  ;;  %v101_v18 = vsub.s32 4, %v84_v1 }
  0x2d   :  { %v385_v25 = vpack.c.bf16 %v48_v24, %v43_v23  ;;  %v53_v29 = vld [vmem:[#allocation2 + $0x60] sm:$0xff]  ;;  %v58_v30 = vld [vmem:[#allocation2 + $0x88] sm:$0xff]  ;;  %v71_v32 = vld [vmem:[#allocation2 + $0xf0] sm:$0xff]  ;;  %v387_v34 = vpack.c.bf16 %v59_v28, %v54_v26 }
  0x2e   :  { %374 = vmatpush1.bf16.msra.mxu0 %v373_v14  ;;  %384 = vmatprep.subr.bf16.mxu1 %v383_v22  ;;  %v76_v33 = vld [vmem:[#allocation2 + $0x118] sm:$0xff]  ;;  %v389_v35 = vpack.c.bf16 %v58_v30, %v53_v29  ;;  %v69_v37 = vld [vmem:[#allocation2 + $0xe0] sm:$0xff]  ;;  %v63_v38 = vld [vmem:[#allocation2 + $0xb0] sm:$0xff] }
  0x2f   :  { %376 = vmatprep.subr.bf16.mxu0 %v375_v17  ;;  %386 = vmatpush1.bf16.msra.mxu1 %v385_v25  ;;  %v64_v36 = vld [vmem:[#allocation2 + $0xb8] sm:$0xff]  ;;  %v74_v41 = vld [vmem:[#allocation2 + $0x108] sm:$0xff]  ;;  %v381_v42 = vpack.c.bf16 %v76_v33, %v71_v32  ;;  %v79_v43 = vld [vmem:[#allocation2 + $0x130] sm:$0xff] }
  0x30   :  { %v68_v39 = vld [vmem:[#allocation2 + $0xd8] sm:$0xff]  ;;  %388 = vmatprep.subr.bf16.mxu1 %v387_v34  ;;  %v391_v40 = vpack.c.bf16 %v69_v37, %v64_v36  ;;  %v45_v44 = vld [vmem:[#allocation2 + $0x20] sm:$0xff]  ;;  %v50_v45 = vld [vmem:[#allocation2 + $0x48] sm:$0xff]  ;;  %v395_v47 = vpack.c.bf16 %v79_v43, %v74_v41 }
  0x31   :  { %v393_v46 = vpack.c.bf16 %v68_v39, %v63_v38  ;;  %v73_v48 = vld [vmem:[#allocation2 + $0x100] sm:$0xff]  ;;  %v78_v49 = vld [vmem:[#allocation2 + $0x128] sm:$0xff]  ;;  %v400_v51 = vpack.c.bf16 %v50_v45, %v45_v44  ;;  %v55_v53 = vld [vmem:[#allocation2 + $0x70] sm:$0xff] }
  0x32   :  { %378 = vmatpush1.bf16.msra.mxu0 %v377_v27  ;;  %v40_v50 = vld [vmem:[%s541_s0] sm:$0xff]  ;;  %v60_v54 = vld [vmem:[#allocation2 + $0x98] sm:$0xff]  ;;  %v397_v55 = vpack.c.bf16 %v78_v49, %v73_v48  ;;  %v70_v58 = vld [vmem:[#allocation2 + $0xe8] sm:$0xff] }
  0x33   :  { %380 = vmatprep.subr.bf16.mxu0 %v379_v31  ;;  %390 = vmatpush1.bf16.msra.mxu1 %v389_v35  ;;  %v403_v56 = vpack.c.bf16 %v60_v54, %v55_v53  ;;  %v65_v57 = vld [vmem:[#allocation2 + $0xc0] sm:$0xff]  ;;  %v75_v60 = vld [vmem:[#allocation2 + $0x110] sm:$0xff]  ;;  %v80_v61 = vld [vmem:[#allocation2 + $0x138] sm:$0xff] }
  0x34   :  { %392 = vmatprep.subr.bf16.mxu1 %v391_v40  ;;  %v406_v59 = vpack.c.bf16 %v70_v58, %v65_v57  ;;  %v409_v62 = vpack.c.bf16 %v80_v61, %v75_v60  ;;  %v81_v2 = vld [vmem:[#allocation4] sm:$0x1f] }
  0x35   :  { %v90_v5 = vrot.slane %v81_v2, %v89_v3  ;;  %v94_v12 = vrot.slane %v81_v2, %v93_v6  ;;  %v98_v13 = vrot.slane %v81_v2, %v97_v7  ;;  %v102_v19 = vrot.slane %v81_v2, %v101_v18 }
  0x36   :  { %382 = vmatpush1.bf16.msra.mxu0 %v381_v42 }
  0x37   :  { %399 = vmatprep.subr.bf16.mxu0 %v471_v52  ;;  %394 = vmatpush1.bf16.msra.mxu1 %v393_v46 }
  0x38   :  { %396 = vmatprep.subr.bf16.mxu1 %v395_v47 }
  0x39   :  { %336 = vmatmul.mubr.msk.f32.vlgmr.msra.gmra.mrb[0].mxu0 %vm108_vm0, %v40_v50 }
  0x3a   :  { %401 = vmatpush3.bf16.msra.mxu0 %v400_v51  ;;  %364 = vmatprep.mubr.msk.f32.mxu0 %vm472_vm1, %v470_v0  ;;  %v85_v0 = vsub.s32 0, %v84_v1 }
  0x3b   :  { %402 = vmatprep.subr.bf16.mxu0 %v471_v52  ;;  %398 = vmatpush1.bf16.msra.mxu1 %v397_v55 }
  0x3c   :  { %v86_v4 = vrot.slane %v81_v2, %v85_v0 }
  0x3e   :  { %404 = vmatpush3.bf16.msra.mxu0 %v403_v56  ;;  %337 = vmatmul.mubr.msk.f32.vlgmr.msra.gmra.mrb[0].mxu1 %vm108_vm0, %v40_v50 }
  0x3f   :  { %405 = vmatprep.subr.bf16.mxu0 %v471_v52 }
  0x42   :  { %407 = vmatpush3.bf16.msra.mxu0 %v406_v59 }
  0x43   :  { %408 = vmatprep.subr.bf16.mxu0 %v471_v52 }
  0x46   :  { %410 = vmatpush3.bf16.msra.mxu0 %v409_v62 }
  0x49   :  { %365 = vmatmul.mubr.msk.f32.vlgmr.msra.gmra.mrb[2].mxu0 %vm108_vm0, %v40_v50 }
 0x10c   :  { %v178_v8 = vpop.f32.mrb[0].mxu0 }
 0x10d   :  { %v179_v9 = vadd.f32 %v178_v8, %v86_v4  ;;  %v180_v10 = vpop.f32.mrb[1].mxu0 }
 0x10e   :  { %v181_v11 = vadd.f32 %v180_v10, %v90_v5 }
 0x10f   :  { %324 = vst [vmem:[%s544_s3] sm:$0xff] %v179_v9 }
 0x110   :  { %325 = vst [vmem:[%s544_s3 + $0x8] sm:$0xff] %v181_v11 }
 0x111   :  { %v249_v14 = vpop.f32.mrb[0].mxu1 }
 0x112   :  { %v250_v15 = vadd.f32 %v249_v14, %v94_v12  ;;  %v251_v16 = vpop.f32.mrb[1].mxu1 }
 0x113   :  { %v252_v17 = vadd.f32 %v251_v16, %v98_v13 }
 0x114   :  { %326 = vst [vmem:[%s544_s3 + $0x10] sm:$0xff] %v250_v15 }
 0x115   :  { %327 = vst [vmem:[%s544_s3 + $0x18] sm:$0xff] %v252_v17 }
 0x11c   :  { %v320_v20 = vpop.f32.mrb[2].mxu0 }
 0x11d   :  { %v321_v21 = vadd.f32 %v320_v20, %v102_v19  ;;  %v366_v22 = vpop.f32.mrb[3].mxu0 }
 0x11f   :  { %329 = vst.msk [vmem:[%s544_s3 + $0x20] sm:$0xff] %vm328_vm2, %v321_v21 }
 0x120   :  { %334 = vsyncpa [#allocation3], 1 }
 0x121   :  { %335 = vsyncpa [#allocation5], 1 }

// kernel: ssl_head_forward.3
= control target key start
LH: loop header
LB: loop body
LE: loop exit
PB: predicated region body
PF: predicated region fallthrough
CT: control target
= control target key end

     0   :  { %s5258_s0 = inlined_call_operand.hbm [shape: bf16[16,64], index: 0, kind: input, shape index: {}]   ;;  %s5259_s1 = inlined_call_operand.hbm [shape: bf16[64,32768], index: 1, kind: input, shape index: {}]   ;;  %s5260_s2 = inlined_call_operand.hbm [shape: f32[1,32768], index: 2, kind: input, shape index: {}]   ;;  %s5261_s3 = inlined_call_operand.hbm [shape: f32[16,32768], index: 3, kind: output, shape index: {}]  }
   0x1   :  { %5270 = sst [smem:[#allocation13_spill]] %s5259_s1 }
   0x2   :  { %8 = vsyncpa [#allocation3], 0 }
   0x3   :  { %9 = vsyncpa [#allocation6], 0 }
   0x4   :  { %11 = vsyncpa [#allocation6 + $0x1], 0 }
   0x5   :  { %12 = vsyncpa [#allocation4], 0 }
   0x6   :  { %14 = vsyncpa [#allocation4 + $0x1], 0  ;;  %s4400_s12 = smov 0   ;;  %s4402_s13 = smov 0  }
   0x7   :  { %s4404_s14 = smov 0   ;;  %s4406_s15 = smov 0  }
   0x8   :  { %s4408_s16 = smov 0   ;;  %s4410_s17 = smov 0  }
   0x9 LB: > { %s32_s18 = sadd.s32 1, %s4361_s16  ;;  %s65_s19 = sadd.s32 1, %s4353_s14  ;;  %s4365_s17 = sphi %s4410_s17, %s20_s17   ;;  %s4361_s16 = sphi %s4408_s16, %s5293_s16   ;;  %s4357_s15 = sphi %s4406_s15, %s5292_s15   ;;  %s4353_s14 = sphi %s4404_s14, %s5291_s14   ;;  %s4349_s13 = sphi %s4402_s13, %s5290_s13   ;;  %s4345_s12 = sphi %s4400_s12, %s5289_s12  }
   0xa   : > { %p34_p0 = scmp.ge.s32.totalorder %s32_s18, 4  ;;  %p72_p1 = scmp.ne.s32.totalorder %s4353_s14, %s4349_s13 }
   0xb   : > { %p73_p2 = scmp.eq.s32.totalorder %s4365_s17, 0  ;;  %p4128_p4 = scmp.lt.s32.totalorder %s4365_s17, 4 }
   0xc   : > { %s5295_s18 = smov (%p34_p0, %s32_s18), 0  ;;  %s172_s21 = sand.u32 1, %s4365_s17  }
   0xd   : > { %5271 = sst [smem:[#allocation12_spill]] %s5295_s18  ;;  %p74_p3 = por %p73_p2, %p72_p1 }
   0xe   : > { %s62_s20 = ssub.s32 %s4361_s16, %s5295_s18  ;;  %s174_s22 = sand.u32 1, %s4353_s14  }
   0xf   : > { %p63_p5 = scmp.eq.s32.totalorder %s62_s20, 0  ;;  %s4099_s23 = sshll.u32 %s4361_s16, 12 }
  0x10   : > { %s3794_s25 = sshll.u32 %s174_s22, 11  ;;  %s5272_s1 = sld [smem:[#allocation13_spill]] }
  0x11   : > { %s4447_s24 = scalar_select %p63_p5, %s4353_s14, %s65_s19  }
  0x12   : > { %p4456_p6 = pnand %p4128_p4, %p74_p3  ;;  %s176_s30 = scalar_lea.vmem [#allocation5], %s3794_s25 }
  0x13   : > { %s183_s4 = sshll.u32 %s176_s30, 4  ;;  %s4462_s5 = scalar_lea.sflag [#allocation6], %s172_s21  ;;  %s4460_s4 = int_to_ptr.vmem [resolvable:$true] %s183_s4 }
  0x14   : > { %s5273_s29 = scalar_select %p4456_p6, 1, 0 }
  0x15   : > { %p5264_p8 = pneg %p4456_p6 }
  0x16   : > { %s4454_s28 = scalar_lea.hbm %s5272_s1, %s4099_s23  ;;  %s4196_s9 = scalar_lea.hbm %s5272_s1, 131072 }
  0x17   : > { %s4191_s6 = scalar_lea.hbm %s4454_s28, 32768  ;;  %p4197_p11 = scmp.lt.u32.totalorder %s4454_s28, %s5272_s1 }
  0x18   : > { %p4192_p7 = scmp.ne.s32.totalorder %s4454_s28, %s4191_s6  ;;  %p4198_p12 = scmp.lt.u32.totalorder %s4196_s9, %s4191_s6 }
  0x19   : > { %p4200_p0 = scmp.lt.u32.totalorder %s4191_s6, %s4454_s28 }
  0x1a   : > { %p4194_p9 = pnand %p5264_p8, %p4192_p7  ;;  %p4199_p13 = por %p4198_p12, %p4197_p11 }
  0x1c   : > { %p4195_p10 = pneg %p4194_p9  ;;  %p4201_p2 = por %p4200_p0, %p4199_p13 }
  0x1e   : > { %p4202_p3 = pnand %p4201_p2, %p4195_p10 }
  0x20   : > { %4205 = shalt.err (!%p4202_p3)
}
  0x21   : > { %s4206_s19 = scalar_lea.vmem %s4460_s4, 32768  ;;  %s4367_s20 = smov [#allocation5]  }
  0x22   : > { %p4207_p4 = scmp.ne.s32.totalorder %s4460_s4, %s4206_s19  ;;  %s4211_s21 = sshll.u32 %s4367_s20, 4  ;;  %s4212_s21 = int_to_ptr.vmem [resolvable:$false] %s4211_s21 }
  0x23   : > { %s4213_s23 = scalar_lea.vmem %s4212_s21, 65536  ;;  %p4214_p9 = scmp.lt.s32.totalorder %s4460_s4, %s4212_s21 }
  0x24   : > { %p4209_p5 = pnand %p4207_p4, %p5264_p8  ;;  %p4215_p11 = scmp.lt.s32.totalorder %s4213_s23, %s4206_s19 }
  0x26   : > { %p4210_p7 = pneg %p4209_p5  ;;  %p4216_p12 = por %p4215_p11, %p4214_p9 }
  0x28   : > { %p4217_p13 = pnand %p4216_p12, %p4210_p7 }
  0x2a   : > { %4220 = shalt.err (!%p4217_p13)
}
  0x2b   : > { %s4368_s25 = smov 16384   ;;  %s4369_s26 = smov 4096  }
  0x2c   : > { %s4370_s27 = smov 256   ;;  %s4491_s30 = sadd.s32 4294967295, %s4365_s17  }
  0x2d   : > { %4119 = dma.hbm_to_vmem [thread:$0]  (!%p4456_p6), %s4454_s28, 32768, %s4460_s4, %s4462_s5, %s4368_s25, %s4369_s26, %s4370_s27  }
  0x2e   : > { %s3790_s6 = sadd.s32 4294967294, %s4365_s17   ;;  %p78_p10 = scmp.ne.s32.totalorder %s4349_s13, %s4345_s12 }
  0x2f   : > { %p5263_p0 = scmp.eq.s32.totalorder %s4491_s30, 0  ;;  %p130_p2 = scmp.eq.s32.totalorder %s4491_s30, 3 }
  0x30   : > { %p136_p3 = scmp.eq.s32.totalorder %s3790_s6, 3  ;;  %p3791_p5 = scmp.ge.s32.totalorder %s4365_s17, 1 }
  0x31   : > { %p4500_p4 = por %p5263_p0, %p78_p10  ;;  %p4508_p7 = por %p130_p2, %p72_p1 }
  0x32   : > { %p4512_p9 = por %p136_p3, %p78_p10  ;;  %p143_p11 = scmp.lt.s32.totalorder %s4365_s17, 5 }
  0x33   : > { %s5274_s7 = scalar_select %p4500_p4, 1, 0 }
  0x34   : > { %s5275_s28 = scalar_select %p4508_p7, 1, 0 }
  0x35   : > { %s5276_s4 = scalar_select %p4512_p9, 1, 0 }
  0x36   : > { %p4517_p12 = pnand %p3791_p5, %p143_p11  ;;  %s4371_s9 = smov [#allocation2]  }
  0x37   : > { %s158_s10 = sshll.u32 %s4371_s9, 4  ;;  %s3797_s11 = sshll.u32 %s174_s22, 6  ;;  %s4521_s10 = int_to_ptr.vmem [resolvable:$true] %s158_s10 }
  0x38   : > { %s5277_s8 = scalar_select %p4517_p12, 1, 0 }
  0x39   : > { %p4112_p13 = pneg %p4517_p12  ;;  %s4100_s19 = sshll.u32 %s4361_s16, 10 }
  0x3a   : > { %s4537_s25 = scalar_lea.hbm %s5260_s2, %s4100_s19  ;;  %s197_s26 = scalar_lea.vmem [#allocation7], %s3797_s11 }
  0x3b   : > { %p4530_p1 = pnand %p4112_p13, %p5263_p0  ;;  %s205_s27 = sshll.u32 %s197_s26, 4  ;;  %s4539_s27 = int_to_ptr.vmem [resolvable:$true] %s205_s27 }
  0x3c   : > { %s4221_s22 = scalar_lea.hbm %s5258_s0, 128 }
  0x3d   : > { %p4222_p10 = scmp.ne.s32.totalorder %s5258_s0, %s4221_s22  ;;  %p4223_p2 = pneg %p4530_p1 }
  0x3e   : > { %p4228_p11 = scmp.lt.u32.totalorder %s4221_s22, %s5258_s0 }
  0x3f   : > { %p4224_p3 = pnand %p4223_p2, %p4222_p10 }
  0x41   : > { %p4225_p5 = pneg %p4224_p3 }
  0x43   : > { %p4230_p13 = pnand %p4228_p11, %p4225_p5 }
  0x45   : > { %4233 = shalt.err (!%p4230_p13)
}
  0x46   : > { %s4234_s11 = scalar_lea.vmem %s4521_s10, 128  ;;  %p4242_p7 = scmp.lt.s32.totalorder %s4521_s10, %s4521_s10 }
  0x47   : > { %p4235_p0 = scmp.ne.s32.totalorder %s4521_s10, %s4234_s11  ;;  %p4243_p4 = scmp.lt.s32.totalorder %s4234_s11, %s4234_s11 }
  0x49   : > { %p4237_p8 = pnand %p4235_p0, %p4223_p2  ;;  %p4244_p12 = por %p4243_p4, %p4242_p7 }
  0x4b   : > { %p4238_p9 = pneg %p4237_p8 }
  0x4d   : > { %p4245_p6 = pnand %p4244_p12, %p4238_p9 }
  0x4f   : > { %4248 = shalt.err (!%p4245_p6)
}
  0x50   : > { %s4372_s1 = smov 64   ;;  %s4373_s18 = smov 4  }
  0x51   : > { %4115 = dma.hbm_to_vmem [thread:$0]  (!%p4530_p1), %s5258_s0, 128, %s4521_s10, [#allocation3], %s4372_s1, %s4372_s1, %s4373_s18  }
  0x52   : > { %s4249_s6 = scalar_lea.hbm %s4537_s25, 1024  ;;  %p5279_p0 = scmp.ne.s32.totalorder %s5273_s29, 0 }
  0x53   : > { %p4250_p8 = scmp.ne.s32.totalorder %s4537_s25, %s4249_s6  ;;  %s4254_s21 = scalar_lea.hbm %s5260_s2, 4096 }
  0x54   : > { %p5280_p4 = pneg %p5279_p0  ;;  %p4255_p9 = scmp.lt.u32.totalorder %s4537_s25, %s5260_s2 }
  0x55   : > { %p4256_p12 = scmp.lt.u32.totalorder %s4254_s21, %s4249_s6  ;;  %p4258_p2 = scmp.lt.u32.totalorder %s4249_s6, %s4537_s25 }
  0x56   : > { %p4252_p7 = pnand %p4250_p8, %p5280_p4 }
  0x57   : > { %p4257_p10 = por %p4256_p12, %p4255_p9 }
  0x58   : > { %p4253_p6 = pneg %p4252_p7 }
  0x59   : > { %p4259_p3 = por %p4258_p2, %p4257_p10 }
  0x5b   : > { %p4260_p5 = pnand %p4259_p3, %p4253_p6 }
  0x5d   : > { %4263 = shalt.err (!%p4260_p5)
}
  0x5e   : > { %s4264_s10 = scalar_lea.vmem %s4539_s27, 1024  ;;  %p5281_p11 = pmov %p5280_p4 }
  0x5f   : > { %p4265_p1 = scmp.ne.s32.totalorder %s4539_s27, %s4264_s10  ;;  %s4374_s20 = smov [#allocation7]  }
  0x60   : > { %s4269_s1 = sshll.u32 %s4374_s20, 4  ;;  %s4270_s1 = int_to_ptr.vmem [resolvable:$false] %s4269_s1 }
  0x61   : > { %p4267_p13 = pnand %p4265_p1, %p5281_p11  ;;  %s4271_s18 = scalar_lea.vmem %s4270_s1, 2048 }
  0x62   : > { %p4272_p4 = scmp.lt.s32.totalorder %s4539_s27, %s4270_s1  ;;  %p4273_p7 = scmp.lt.s32.totalorder %s4271_s18, %s4264_s10 }
  0x63   : > { %p4268_p8 = pneg %p4267_p13 }
  0x64   : > { %p4274_p9 = por %p4273_p7, %p4272_p4 }
  0x66   : > { %p4275_p12 = pnand %p4274_p9, %p4268_p8 }
  0x68   : > { %4278 = shalt.err (!%p4275_p12)
}
  0x69   : > { %4122 = dma.hbm_to_vmem [thread:$0]  (!%p5279_p0), %s4537_s25, 1024, %s4539_s27, %s4462_s5  }
  0x6a   : > { %p5282_p6 = scmp.ne.s32.totalorder %s5277_s8, 0 }
  0x6b   : > { %p5283_p10 = scmp.eq.s32.totalorder (!%p5282_p6), %s4491_s30, 0 }
  0x6c   : > { %214 = sbr.rel (%p5282_p6) target bundleno = 614 (0x266), region = 32 }
  0x73   : > { %4332 = dma.done.wait (%p5283_p10), [#allocation3], 128   ;;  %p5284_p2 = pmov %p5283_p10 }
  0x74   : > { %s220_s19 = sand.u32 1, %s4491_s30   ;;  %s4594_s26 = sand.u32 1, %s4349_s13  }
  0x75   : > { %4334 = vsyncadd (%p5284_p2), [#allocation3], 4294967168  ;;  %s3802_s29 = sshll.u32 %s4594_s26, 11  ;;  %s221_s6 = scalar_lea.sflag [#allocation6], %s220_s19 }
  0x76   : > { %s4597_s9 = scalar_lea.vmem [#allocation5], %s3802_s29  ;;  %p5285_p0 = scmp.ne.s32.totalorder %s5274_s7, 0 }
  0x78   : > { %4336 = dma.done.wait (%p5285_p0), %s221_s6, 33792  }
  0x79   : > { %4338 = vsyncadd (%p5285_p0), %s221_s6, 4294933504  ;;  %v4375_v0 = vmov 0   ;;  %v269_v1 = vld [vmem:[%s4597_s9] sm:$0xff]  ;;  %v270_v3 = vld [vmem:[%s4597_s9 + $0x8] sm:$0xff]  ;;  %vm2146_vm0 = vcmask 523264   ;;  %s3803_s5 = sshll.u32 %s4594_s26, 6 }
  0x7a   : > { %2182 = vmatprep.mubr.bf16.mxu0 %v4375_v0  ;;  %2225 = vmatprep.mubr.bf16.mxu1 %v4375_v0  ;;  %v301_v2 = vld [vmem:[%s4597_s9 + $0x100] sm:$0xff]  ;;  %v302_v5 = vld [vmem:[%s4597_s9 + $0x108] sm:$0xff]  ;;  %v271_v31 = vld [vmem:[%s4597_s9 + $0x10] sm:$0xff]  ;;  %s4925_s30 = scalar_lea.vmem [#allocation7], %s3803_s5  ;;  %s3804_s7 = sshll.u32 %s4594_s26, 10 }
  0x7b   : > { %v3807_v4 = vcombine.high %v269_v1, %v301_v2  ;;  %v3806_v6 = vcombine.low %v269_v1, %v301_v2  ;;  %v333_v7 = vld [vmem:[%s4597_s9 + $0x200] sm:$0xff]  ;;  %v3809_v9 = vcombine.high %v270_v3, %v302_v5  ;;  %v3808_v10 = vcombine.low %v270_v3, %v302_v5  ;;  %v334_v12 = vld [vmem:[%s4597_s9 + $0x208] sm:$0xff]  ;;  %v303_v32 = vld [vmem:[%s4597_s9 + $0x110] sm:$0xff]  ;;  %s4964_s8 = scalar_lea.vmem [#allocation8], %s3804_s7  ;;  %s4101_s25 = sshll.u32 %s4357_s15, 13 }
  0x7c   : > { %v365_v8 = vld [vmem:[%s4597_s9 + $0x300] sm:$0xff]  ;;  %v366_v13 = vld [vmem:[%s4597_s9 + $0x308] sm:$0xff]  ;;  %v272_v33 = vld [vmem:[%s4597_s9 + $0x18] sm:$0xff]  ;;  %v3811_v37 = vcombine.high %v271_v31, %v303_v32  ;;  %v3810_v44 = vcombine.low %v271_v31, %v303_v32  ;;  %s3671_s27 = sshll.u32 %s4964_s8, 4  ;;  %s5201_s21 = scalar_lea.hbm %s5261_s3, %s4101_s25  ;;  %s5205_s27 = int_to_ptr.vmem [resolvable:$true] %s3671_s27 }
  0x7d   : > { %v3871_v11 = vcombine.high %v333_v7, %v365_v8  ;;  %v397_v14 = vld [vmem:[%s4597_s9 + $0x400] sm:$0xff]  ;;  %2150 = vmatprep.subr.bf16.mxu0 %v3807_v4  ;;  %v3873_v15 = vcombine.high %v334_v12, %v366_v13  ;;  %v398_v17 = vld [vmem:[%s4597_s9 + $0x408] sm:$0xff]  ;;  %2193 = vmatprep.subr.bf16.mxu1 %v3809_v9  ;;  %v3870_v19 = vcombine.low %v333_v7, %v365_v8  ;;  %v304_v34 = vld [vmem:[%s4597_s9 + $0x118] sm:$0xff]  ;;  %s3655_s23 = scalar_lea.sflag [#allocation4], %s4594_s26  ;;  %s4279_s11 = scalar_lea.vmem %s5205_s27, 16384 }
  0x7e   : > { %v429_v16 = vld [vmem:[%s4597_s9 + $0x500] sm:$0xff]  ;;  %v430_v18 = vld [vmem:[%s4597_s9 + $0x508] sm:$0xff]  ;;  %2151 = vmatpush1.bf16.msra.mxu0 %v3806_v6  ;;  %2194 = vmatpush1.bf16.msra.mxu1 %v3808_v10  ;;  %v3872_v20 = vcombine.low %v334_v12, %v366_v13  ;;  %v3813_v38 = vcombine.high %v272_v33, %v304_v34  ;;  %v335_v39 = vld [vmem:[%s4597_s9 + $0x210] sm:$0xff]  ;;  %v3812_v45 = vcombine.low %v272_v33, %v304_v34  ;;  %p4280_p3 = scmp.ne.s32.totalorder %s5205_s27, %s4279_s11  ;;  %p5286_p5 = scmp.ne.s32.totalorder %s5275_s28, 0 }
  0x7f   : > { %2152 = vmatprep.subr.bf16.mxu0 %v3871_v11  ;;  %v3935_v21 = vcombine.high %v397_v14, %v429_v16  ;;  %2195 = vmatprep.subr.bf16.mxu1 %v3873_v15  ;;  %v3937_v22 = vcombine.high %v398_v17, %v430_v18  ;;  %v461_v23 = vld [vmem:[%s4597_s9 + $0x600] sm:$0xff]  ;;  %v462_v25 = vld [vmem:[%s4597_s9 + $0x608] sm:$0xff]  ;;  %v3934_v27 = vcombine.low %v397_v14, %v429_v16  ;;  %v367_v40 = vld [vmem:[%s4597_s9 + $0x310] sm:$0xff]  ;;  %s4376_s10 = smov [#allocation8]  }
  0x80   : > { %v493_v24 = vld [vmem:[%s4597_s9 + $0x700] sm:$0xff]  ;;  %v494_v26 = vld [vmem:[%s4597_s9 + $0x708] sm:$0xff]  ;;  %v3936_v28 = vcombine.low %v398_v17, %v430_v18  ;;  %v4627_v41 = vld [vmem:[#allocation2] sm:$0xff]   ;;  %v3875_v46 = vcombine.high %v335_v39, %v367_v40  ;;  %v3874_v52 = vcombine.low %v335_v39, %v367_v40  ;;  %p4281_p1 = pnand %p4280_p3, %p5286_p5  ;;  %s4283_s20 = sshll.u32 %s4376_s10, 4  ;;  %s4284_s20 = int_to_ptr.vmem [resolvable:$false] %s4283_s20 }
  0x81   : > { %v3999_v29 = vcombine.high %v461_v23, %v493_v24  ;;  %v4001_v30 = vcombine.high %v462_v25, %v494_v26  ;;  %v3998_v35 = vcombine.low %v461_v23, %v493_v24  ;;  %v4000_v36 = vcombine.low %v462_v25, %v494_v26  ;;  %v336_v42 = vld [vmem:[%s4597_s9 + $0x218] sm:$0xff]  ;;  %v399_v48 = vld [vmem:[%s4597_s9 + $0x410] sm:$0xff]  ;;  %v273_v1 = vld [vmem:[%s4597_s9 + $0x20] sm:$0xff]  ;;  %s4285_s1 = scalar_lea.vmem %s4284_s20, 32768  ;;  %p4286_p13 = scmp.lt.s32.totalorder %s5205_s27, %s4284_s20 }
  0x82   : > { %2153 = vmatpush1.bf16.msra.mxu0 %v3870_v19  ;;  %2196 = vmatpush1.bf16.msra.mxu1 %v3872_v20  ;;  %v368_v43 = vld [vmem:[%s4597_s9 + $0x318] sm:$0xff]  ;;  %v431_v49 = vld [vmem:[%s4597_s9 + $0x510] sm:$0xff]  ;;  %v305_v2 = vld [vmem:[%s4597_s9 + $0x120] sm:$0xff]  ;;  %p4282_p11 = pneg %p4281_p1  ;;  %p4287_p8 = scmp.lt.s32.totalorder %s4285_s1, %s4279_s11 }
  0x83   : > { %2154 = vmatprep.subr.bf16.mxu0 %v3935_v21  ;;  %2197 = vmatprep.subr.bf16.mxu1 %v3937_v22  ;;  %v3877_v47 = vcombine.high %v336_v42, %v368_v43  ;;  %v400_v50 = vld [vmem:[%s4597_s9 + $0x418] sm:$0xff]  ;;  %v3876_v53 = vcombine.low %v336_v42, %v368_v43  ;;  %v3939_v54 = vcombine.high %v399_v48, %v431_v49  ;;  %v463_v56 = vld [vmem:[%s4597_s9 + $0x610] sm:$0xff]  ;;  %v274_v3 = vld [vmem:[%s4597_s9 + $0x28] sm:$0xff] }
  0x84   : > { %v432_v51 = vld [vmem:[%s4597_s9 + $0x518] sm:$0xff]  ;;  %v495_v57 = vld [vmem:[%s4597_s9 + $0x710] sm:$0xff]  ;;  %v3938_v60 = vcombine.low %v399_v48, %v431_v49  ;;  %v306_v4 = vld [vmem:[%s4597_s9 + $0x128] sm:$0xff]  ;;  %v3815_v7 = vcombine.high %v273_v1, %v305_v2  ;;  %v3814_v13 = vcombine.low %v273_v1, %v305_v2  ;;  %p4288_p4 = por %p4287_p8, %p4286_p13 }
  0x85   : > { %v3941_v55 = vcombine.high %v400_v50, %v432_v51  ;;  %v464_v58 = vld [vmem:[%s4597_s9 + $0x618] sm:$0xff]  ;;  %v3940_v61 = vcombine.low %v400_v50, %v432_v51  ;;  %v4003_v62 = vcombine.high %v463_v56, %v495_v57  ;;  %v4002_v5 = vcombine.low %v463_v56, %v495_v57  ;;  %v337_v9 = vld [vmem:[%s4597_s9 + $0x220] sm:$0xff]  ;;  %v338_v11 = vld [vmem:[%s4597_s9 + $0x228] sm:$0xff] }
  0x86   : > { %2155 = vmatpush1.bf16.msra.mxu0 %v3934_v27  ;;  %2198 = vmatpush1.bf16.msra.mxu1 %v3936_v28  ;;  %v496_v59 = vld [vmem:[%s4597_s9 + $0x718] sm:$0xff]  ;;  %v3817_v8 = vcombine.high %v274_v3, %v306_v4  ;;  %v369_v10 = vld [vmem:[%s4597_s9 + $0x320] sm:$0xff]  ;;  %v370_v12 = vld [vmem:[%s4597_s9 + $0x328] sm:$0xff]  ;;  %v3816_v14 = vcombine.low %v274_v3, %v306_v4  ;;  %p4289_p7 = pnand %p4288_p4, %p4282_p11 }
  0x87   : > { %2156 = vmatprep.subr.bf16.mxu0 %v3999_v29  ;;  %2199 = vmatprep.subr.bf16.mxu1 %v4001_v30  ;;  %v4005_v63 = vcombine.high %v464_v58, %v496_v59  ;;  %v4004_v6 = vcombine.low %v464_v58, %v496_v59  ;;  %v3879_v15 = vcombine.high %v337_v9, %v369_v10  ;;  %v401_v17 = vld [vmem:[%s4597_s9 + $0x420] sm:$0xff]  ;;  %v402_v19 = vld [vmem:[%s4597_s9 + $0x428] sm:$0xff]  ;;  %v275_v33 = vld [vmem:[%s4597_s9 + $0x30] sm:$0xff] }
  0x88   : > { %v3881_v16 = vcombine.high %v338_v11, %v370_v12  ;;  %v433_v18 = vld [vmem:[%s4597_s9 + $0x520] sm:$0xff]  ;;  %v434_v20 = vld [vmem:[%s4597_s9 + $0x528] sm:$0xff]  ;;  %v3878_v21 = vcombine.low %v337_v9, %v369_v10  ;;  %v3880_v22 = vcombine.low %v338_v11, %v370_v12  ;;  %v307_v34 = vld [vmem:[%s4597_s9 + $0x130] sm:$0xff] }
  0x89   : > { %v3943_v23 = vcombine.high %v401_v17, %v433_v18  ;;  %v3945_v24 = vcombine.high %v402_v19, %v434_v20  ;;  %v465_v25 = vld [vmem:[%s4597_s9 + $0x620] sm:$0xff]  ;;  %v466_v27 = vld [vmem:[%s4597_s9 + $0x628] sm:$0xff]  ;;  %v3942_v29 = vcombine.low %v401_v17, %v433_v18  ;;  %v3944_v30 = vcombine.low %v402_v19, %v434_v20  ;;  %v339_v42 = vld [vmem:[%s4597_s9 + $0x230] sm:$0xff] }
  0x8a   : > { %2157 = vmatpush1.bf16.msra.mxu0 %v3998_v35  ;;  %2200 = vmatpush1.bf16.msra.mxu1 %v4000_v36  ;;  %v497_v26 = vld [vmem:[%s4597_s9 + $0x720] sm:$0xff]  ;;  %v498_v28 = vld [vmem:[%s4597_s9 + $0x728] sm:$0xff]  ;;  %v276_v35 = vld [vmem:[%s4597_s9 + $0x38] sm:$0xff]  ;;  %v3819_v39 = vcombine.high %v275_v33, %v307_v34 }
  0x8b   : > { %2236 = vmatprep.subr.bf16.mxu0 %v3811_v37  ;;  %2279 = vmatprep.subr.bf16.mxu1 %v3813_v38  ;;  %v4007_v31 = vcombine.high %v465_v25, %v497_v26  ;;  %v4009_v32 = vcombine.high %v466_v27, %v498_v28  ;;  %v308_v36 = vld [vmem:[%s4597_s9 + $0x138] sm:$0xff]  ;;  %v4006_v37 = vcombine.low %v465_v25, %v497_v26  ;;  %v371_v43 = vld [vmem:[%s4597_s9 + $0x330] sm:$0xff]  ;;  %v277_v3 = vld [vmem:[%s4597_s9 + $0x40] sm:$0xff] }
  0x8c   : > { %v4008_v38 = vcombine.low %v466_v27, %v498_v28  ;;  %v3821_v40 = vcombine.high %v276_v35, %v308_v36  ;;  %v3883_v48 = vcombine.high %v339_v42, %v371_v43  ;;  %v403_v50 = vld [vmem:[%s4597_s9 + $0x430] sm:$0xff]  ;;  %v309_v4 = vld [vmem:[%s4597_s9 + $0x140] sm:$0xff] }
  0x8d   : > { %4062 = vmatmul.mubr.msk.bf16.vlgmr.msra.gmra.mrb[0].mxu0 %vm2146_vm0, %v4627_v41  ;;  %4063 = vmatmul.mubr.msk.bf16.vlgmr.msra.gmra.mrb[0].mxu1 %vm2146_vm0, %v4627_v41  ;;  %v435_v51 = vld [vmem:[%s4597_s9 + $0x530] sm:$0xff]  ;;  %v3823_v9 = vcombine.high %v277_v3, %v309_v4  ;;  %v341_v11 = vld [vmem:[%s4597_s9 + $0x240] sm:$0xff] }
  0x8e   : > { %2237 = vmatpush1.bf16.msra.mxu0 %v3810_v44  ;;  %2280 = vmatpush1.bf16.msra.mxu1 %v3812_v45  ;;  %v340_v44 = vld [vmem:[%s4597_s9 + $0x238] sm:$0xff]  ;;  %v3947_v56 = vcombine.high %v403_v50, %v435_v51  ;;  %v467_v58 = vld [vmem:[%s4597_s9 + $0x630] sm:$0xff]  ;;  %v373_v12 = vld [vmem:[%s4597_s9 + $0x340] sm:$0xff] }
  0x8f   : > { %2238 = vmatprep.subr.bf16.mxu0 %v3875_v46  ;;  %2281 = vmatprep.subr.bf16.mxu1 %v3877_v47  ;;  %v372_v45 = vld [vmem:[%s4597_s9 + $0x338] sm:$0xff]  ;;  %v3818_v46 = vcombine.low %v275_v33, %v307_v34  ;;  %v3820_v47 = vcombine.low %v276_v35, %v308_v36  ;;  %v499_v59 = vld [vmem:[%s4597_s9 + $0x730] sm:$0xff]  ;;  %v3887_v17 = vcombine.high %v341_v11, %v373_v12  ;;  %v405_v19 = vld [vmem:[%s4597_s9 + $0x440] sm:$0xff] }
  0x90   : > { %2268 = vmatprep.mubr.bf16.mxu0 %v4375_v0  ;;  %2311 = vmatprep.mubr.bf16.mxu1 %v4375_v0  ;;  %v3885_v49 = vcombine.high %v340_v44, %v372_v45  ;;  %v4011_v1 = vcombine.high %v467_v58, %v499_v59  ;;  %v437_v20 = vld [vmem:[%s4597_s9 + $0x540] sm:$0xff]  ;;  %v279_v35 = vld [vmem:[%s4597_s9 + $0x50] sm:$0xff] }
  0x91   : > { %v3951_v25 = vcombine.high %v405_v19, %v437_v20  ;;  %v469_v27 = vld [vmem:[%s4597_s9 + $0x640] sm:$0xff]  ;;  %v311_v36 = vld [vmem:[%s4597_s9 + $0x150] sm:$0xff] }
  0x92   : > { %2239 = vmatpush1.bf16.msra.mxu0 %v3874_v52  ;;  %2282 = vmatpush1.bf16.msra.mxu1 %v3876_v53  ;;  %v404_v52 = vld [vmem:[%s4597_s9 + $0x438] sm:$0xff]  ;;  %v501_v28 = vld [vmem:[%s4597_s9 + $0x740] sm:$0xff] }
  0x93   : > { %2240 = vmatprep.subr.bf16.mxu0 %v3939_v54  ;;  %2283 = vmatprep.subr.bf16.mxu1 %v3941_v55  ;;  %v436_v53 = vld [vmem:[%s4597_s9 + $0x538] sm:$0xff]  ;;  %v3882_v54 = vcombine.low %v339_v42, %v371_v43  ;;  %v3884_v55 = vcombine.low %v340_v44, %v372_v45  ;;  %v4015_v33 = vcombine.high %v469_v27, %v501_v28  ;;  %v343_v44 = vld [vmem:[%s4597_s9 + $0x250] sm:$0xff] }
  0x94   : > { %v3949_v57 = vcombine.high %v404_v52, %v436_v53  ;;  %v3827_v42 = vcombine.high %v279_v35, %v311_v36  ;;  %v375_v45 = vld [vmem:[%s4597_s9 + $0x350] sm:$0xff] }
  0x96   : > { %2241 = vmatpush1.bf16.msra.mxu0 %v3938_v60  ;;  %2284 = vmatpush1.bf16.msra.mxu1 %v3940_v61  ;;  %v468_v60 = vld [vmem:[%s4597_s9 + $0x638] sm:$0xff] }
  0x97   : > { %2242 = vmatprep.subr.bf16.mxu0 %v4003_v62  ;;  %2285 = vmatprep.subr.bf16.mxu1 %v4005_v63  ;;  %v500_v61 = vld [vmem:[%s4597_s9 + $0x738] sm:$0xff]  ;;  %v3946_v62 = vcombine.low %v403_v50, %v435_v51  ;;  %v3948_v63 = vcombine.low %v404_v52, %v436_v53  ;;  %v3891_v50 = vcombine.high %v343_v44, %v375_v45  ;;  %v407_v52 = vld [vmem:[%s4597_s9 + $0x450] sm:$0xff] }
  0x98   : > { %v4013_v2 = vcombine.high %v468_v60, %v500_v61  ;;  %v439_v53 = vld [vmem:[%s4597_s9 + $0x550] sm:$0xff] }
  0x9a   : > { %2243 = vmatpush1.bf16.msra.mxu0 %v4002_v5  ;;  %2286 = vmatpush1.bf16.msra.mxu1 %v4004_v6  ;;  %v278_v5 = vld [vmem:[%s4597_s9 + $0x48] sm:$0xff] }
  0x9b   : > { %2322 = vmatprep.subr.bf16.mxu0 %v3815_v7  ;;  %2365 = vmatprep.subr.bf16.mxu1 %v3817_v8  ;;  %v310_v6 = vld [vmem:[%s4597_s9 + $0x148] sm:$0xff]  ;;  %v4010_v7 = vcombine.low %v467_v58, %v499_v59  ;;  %v4012_v8 = vcombine.low %v468_v60, %v500_v61  ;;  %v3955_v58 = vcombine.high %v407_v52, %v439_v53  ;;  %v471_v60 = vld [vmem:[%s4597_s9 + $0x650] sm:$0xff] }
  0x9c   : > { %v3825_v10 = vcombine.high %v278_v5, %v310_v6  ;;  %v503_v61 = vld [vmem:[%s4597_s9 + $0x750] sm:$0xff] }
  0x9d   : > { %4064 = vmatmul.mubr.msk.bf16.vlgmr.msra.gmra.mrb[4].mxu0 %vm2146_vm0, %v4627_v41  ;;  %4065 = vmatmul.mubr.msk.bf16.vlgmr.msra.gmra.mrb[4].mxu1 %vm2146_vm0, %v4627_v41 }
  0x9e   : > { %2323 = vmatpush1.bf16.msra.mxu0 %v3814_v13  ;;  %2366 = vmatpush1.bf16.msra.mxu1 %v3816_v14  ;;  %v342_v13 = vld [vmem:[%s4597_s9 + $0x248] sm:$0xff] }
  0x9f   : > { %2324 = vmatprep.subr.bf16.mxu0 %v3879_v15  ;;  %2367 = vmatprep.subr.bf16.mxu1 %v3881_v16  ;;  %v374_v14 = vld [vmem:[%s4597_s9 + $0x348] sm:$0xff]  ;;  %v3822_v15 = vcombine.low %v277_v3, %v309_v4  ;;  %v3824_v16 = vcombine.low %v278_v5, %v310_v6  ;;  %v4019_v3 = vcombine.high %v471_v60, %v503_v61  ;;  %v281_v5 = vld [vmem:[%s4597_s9 + $0x60] sm:$0xff] }
  0xa0   : > { %2354 = vmatprep.mubr.bf16.mxu0 %v4375_v0  ;;  %2397 = vmatprep.mubr.bf16.mxu1 %v4375_v0  ;;  %v3889_v18 = vcombine.high %v342_v13, %v374_v14  ;;  %v313_v6 = vld [vmem:[%s4597_s9 + $0x160] sm:$0xff] }
  0xa2   : > { %2325 = vmatpush1.bf16.msra.mxu0 %v3878_v21  ;;  %2368 = vmatpush1.bf16.msra.mxu1 %v3880_v22  ;;  %v406_v21 = vld [vmem:[%s4597_s9 + $0x448] sm:$0xff] }
  0xa3   : > { %2326 = vmatprep.subr.bf16.mxu0 %v3943_v23  ;;  %2369 = vmatprep.subr.bf16.mxu1 %v3945_v24  ;;  %v438_v22 = vld [vmem:[%s4597_s9 + $0x548] sm:$0xff]  ;;  %v3886_v23 = vcombine.low %v341_v11, %v373_v12  ;;  %v3888_v24 = vcombine.low %v342_v13, %v374_v14  ;;  %v3831_v11 = vcombine.high %v281_v5, %v313_v6  ;;  %v345_v13 = vld [vmem:[%s4597_s9 + $0x260] sm:$0xff] }
  0xa4   : > { %v3953_v26 = vcombine.high %v406_v21, %v438_v22  ;;  %v377_v14 = vld [vmem:[%s4597_s9 + $0x360] sm:$0xff] }
  0xa6   : > { %2327 = vmatpush1.bf16.msra.mxu0 %v3942_v29  ;;  %2370 = vmatpush1.bf16.msra.mxu1 %v3944_v30  ;;  %v470_v29 = vld [vmem:[%s4597_s9 + $0x648] sm:$0xff] }
  0xa7   : > { %2328 = vmatprep.subr.bf16.mxu0 %v4007_v31  ;;  %2371 = vmatprep.subr.bf16.mxu1 %v4009_v32  ;;  %v502_v30 = vld [vmem:[%s4597_s9 + $0x748] sm:$0xff]  ;;  %v3950_v31 = vcombine.low %v405_v19, %v437_v20  ;;  %v3952_v32 = vcombine.low %v406_v21, %v438_v22  ;;  %v3895_v19 = vcombine.high %v345_v13, %v377_v14  ;;  %v409_v21 = vld [vmem:[%s4597_s9 + $0x460] sm:$0xff] }
  0xa8   : > { %v4017_v34 = vcombine.high %v470_v29, %v502_v30  ;;  %v441_v22 = vld [vmem:[%s4597_s9 + $0x560] sm:$0xff] }
  0xaa   : > { %2329 = vmatpush1.bf16.msra.mxu0 %v4006_v37  ;;  %2372 = vmatpush1.bf16.msra.mxu1 %v4008_v38  ;;  %v280_v37 = vld [vmem:[%s4597_s9 + $0x58] sm:$0xff] }
  0xab   : > { %2408 = vmatprep.subr.bf16.mxu0 %v3819_v39  ;;  %2451 = vmatprep.subr.bf16.mxu1 %v3821_v40  ;;  %v312_v38 = vld [vmem:[%s4597_s9 + $0x158] sm:$0xff]  ;;  %v4014_v39 = vcombine.low %v469_v27, %v501_v28  ;;  %v4016_v40 = vcombine.low %v470_v29, %v502_v30  ;;  %v3959_v27 = vcombine.high %v409_v21, %v441_v22  ;;  %v473_v29 = vld [vmem:[%s4597_s9 + $0x660] sm:$0xff] }
  0xac   : > { %v3829_v43 = vcombine.high %v280_v37, %v312_v38  ;;  %v505_v30 = vld [vmem:[%s4597_s9 + $0x760] sm:$0xff] }
  0xad   : > { %4066 = vmatmul.mubr.msk.bf16.vlgmr.msra.gmra.mrb[8].mxu0 %vm2146_vm0, %v4627_v41  ;;  %4067 = vmatmul.mubr.msk.bf16.vlgmr.msra.gmra.mrb[8].mxu1 %vm2146_vm0, %v4627_v41 }
  0xae   : > { %2409 = vmatpush1.bf16.msra.mxu0 %v3818_v46  ;;  %2452 = vmatpush1.bf16.msra.mxu1 %v3820_v47  ;;  %v344_v46 = vld [vmem:[%s4597_s9 + $0x258] sm:$0xff] }
  0xaf   : > { %2410 = vmatprep.subr.bf16.mxu0 %v3883_v48  ;;  %2453 = vmatprep.subr.bf16.mxu1 %v3885_v49  ;;  %v376_v47 = vld [vmem:[%s4597_s9 + $0x358] sm:$0xff]  ;;  %v3826_v48 = vcombine.low %v279_v35, %v311_v36  ;;  %v3828_v49 = vcombine.low %v280_v37, %v312_v38  ;;  %v4023_v35 = vcombine.high %v473_v29, %v505_v30  ;;  %v283_v37 = vld [vmem:[%s4597_s9 + $0x70] sm:$0xff] }
  0xb0   : > { %2440 = vmatprep.mubr.bf16.mxu0 %v4375_v0  ;;  %2483 = vmatprep.mubr.bf16.mxu1 %v4375_v0  ;;  %v3893_v51 = vcombine.high %v344_v46, %v376_v47  ;;  %v315_v38 = vld [vmem:[%s4597_s9 + $0x170] sm:$0xff] }
  0xb2   : > { %2411 = vmatpush1.bf16.msra.mxu0 %v3882_v54  ;;  %2454 = vmatpush1.bf16.msra.mxu1 %v3884_v55  ;;  %v408_v54 = vld [vmem:[%s4597_s9 + $0x458] sm:$0xff] }
  0xb3   : > { %2412 = vmatprep.subr.bf16.mxu0 %v3947_v56  ;;  %2455 = vmatprep.subr.bf16.mxu1 %v3949_v57  ;;  %v440_v55 = vld [vmem:[%s4597_s9 + $0x558] sm:$0xff]  ;;  %v3890_v56 = vcombine.low %v343_v44, %v375_v45  ;;  %v3892_v57 = vcombine.low %v344_v46, %v376_v47  ;;  %v3835_v44 = vcombine.high %v283_v37, %v315_v38  ;;  %v347_v46 = vld [vmem:[%s4597_s9 + $0x270] sm:$0xff] }
  0xb4   : > { %v3957_v59 = vcombine.high %v408_v54, %v440_v55  ;;  %v379_v47 = vld [vmem:[%s4597_s9 + $0x370] sm:$0xff] }
  0xb6   : > { %2413 = vmatpush1.bf16.msra.mxu0 %v3946_v62  ;;  %2456 = vmatpush1.bf16.msra.mxu1 %v3948_v63  ;;  %v472_v62 = vld [vmem:[%s4597_s9 + $0x658] sm:$0xff] }
  0xb7   : > { %2414 = vmatprep.subr.bf16.mxu0 %v4011_v1  ;;  %2457 = vmatprep.subr.bf16.mxu1 %v4013_v2  ;;  %v504_v63 = vld [vmem:[%s4597_s9 + $0x758] sm:$0xff]  ;;  %v3954_v1 = vcombine.low %v407_v52, %v439_v53  ;;  %v3956_v2 = vcombine.low %v408_v54, %v440_v55  ;;  %v3899_v52 = vcombine.high %v347_v46, %v379_v47  ;;  %v411_v54 = vld [vmem:[%s4597_s9 + $0x470] sm:$0xff] }
  0xb8   : > { %v4021_v4 = vcombine.high %v472_v62, %v504_v63  ;;  %v443_v55 = vld [vmem:[%s4597_s9 + $0x570] sm:$0xff] }
  0xba   : > { %2415 = vmatpush1.bf16.msra.mxu0 %v4010_v7  ;;  %2458 = vmatpush1.bf16.msra.mxu1 %v4012_v8  ;;  %v282_v7 = vld [vmem:[%s4597_s9 + $0x68] sm:$0xff] }
  0xbb   : > { %2494 = vmatprep.subr.bf16.mxu0 %v3823_v9  ;;  %2537 = vmatprep.subr.bf16.mxu1 %v3825_v10  ;;  %v314_v8 = vld [vmem:[%s4597_s9 + $0x168] sm:$0xff]  ;;  %v4018_v9 = vcombine.low %v471_v60, %v503_v61  ;;  %v4020_v10 = vcombine.low %v472_v62, %v504_v63  ;;  %v3963_v60 = vcombine.high %v411_v54, %v443_v55  ;;  %v475_v62 = vld [vmem:[%s4597_s9 + $0x670] sm:$0xff] }
  0xbc   : > { %v3833_v12 = vcombine.high %v282_v7, %v314_v8  ;;  %v507_v63 = vld [vmem:[%s4597_s9 + $0x770] sm:$0xff] }
  0xbd   : > { %4068 = vmatmul.mubr.msk.bf16.vlgmr.msra.gmra.mrb[12].mxu0 %vm2146_vm0, %v4627_v41  ;;  %4069 = vmatmul.mubr.msk.bf16.vlgmr.msra.gmra.mrb[12].mxu1 %vm2146_vm0, %v4627_v41 }
  0xbe   : > { %2495 = vmatpush1.bf16.msra.mxu0 %v3822_v15  ;;  %2538 = vmatpush1.bf16.msra.mxu1 %v3824_v16  ;;  %v346_v15 = vld [vmem:[%s4597_s9 + $0x268] sm:$0xff] }
  0xbf   : > { %2496 = vmatprep.subr.bf16.mxu0 %v3887_v17  ;;  %2539 = vmatprep.subr.bf16.mxu1 %v3889_v18  ;;  %v378_v16 = vld [vmem:[%s4597_s9 + $0x368] sm:$0xff]  ;;  %v3830_v17 = vcombine.low %v281_v5, %v313_v6  ;;  %v3832_v18 = vcombine.low %v282_v7, %v314_v8  ;;  %v4027_v5 = vcombine.high %v475_v62, %v507_v63  ;;  %v285_v7 = vld [vmem:[%s4597_s9 + $0x80] sm:$0xff] }
  0xc0   : > { %2526 = vmatprep.mubr.bf16.mxu0 %v4375_v0  ;;  %2569 = vmatprep.mubr.bf16.mxu1 %v4375_v0  ;;  %v3897_v20 = vcombine.high %v346_v15, %v378_v16  ;;  %v317_v8 = vld [vmem:[%s4597_s9 + $0x180] sm:$0xff] }
  0xc2   : > { %2497 = vmatpush1.bf16.msra.mxu0 %v3886_v23  ;;  %2540 = vmatpush1.bf16.msra.mxu1 %v3888_v24  ;;  %v410_v23 = vld [vmem:[%s4597_s9 + $0x468] sm:$0xff] }
  0xc3   : > { %2498 = vmatprep.subr.bf16.mxu0 %v3951_v25  ;;  %2541 = vmatprep.subr.bf16.mxu1 %v3953_v26  ;;  %v442_v24 = vld [vmem:[%s4597_s9 + $0x568] sm:$0xff]  ;;  %v3894_v25 = vcombine.low %v345_v13, %v377_v14  ;;  %v3896_v26 = vcombine.low %v346_v15, %v378_v16  ;;  %v3839_v13 = vcombine.high %v285_v7, %v317_v8  ;;  %v349_v15 = vld [vmem:[%s4597_s9 + $0x280] sm:$0xff] }
  0xc4   : > { %v3961_v28 = vcombine.high %v410_v23, %v442_v24  ;;  %v381_v16 = vld [vmem:[%s4597_s9 + $0x380] sm:$0xff] }
  0xc6   : > { %2499 = vmatpush1.bf16.msra.mxu0 %v3950_v31  ;;  %2542 = vmatpush1.bf16.msra.mxu1 %v3952_v32  ;;  %v474_v31 = vld [vmem:[%s4597_s9 + $0x668] sm:$0xff] }
  0xc7   : > { %2500 = vmatprep.subr.bf16.mxu0 %v4015_v33  ;;  %2543 = vmatprep.subr.bf16.mxu1 %v4017_v34  ;;  %v506_v32 = vld [vmem:[%s4597_s9 + $0x768] sm:$0xff]  ;;  %v3958_v33 = vcombine.low %v409_v21, %v441_v22  ;;  %v3960_v34 = vcombine.low %v410_v23, %v442_v24  ;;  %v3903_v21 = vcombine.high %v349_v15, %v381_v16  ;;  %v413_v23 = vld [vmem:[%s4597_s9 + $0x480] sm:$0xff] }
  0xc8   : > { %v4025_v36 = vcombine.high %v474_v31, %v506_v32  ;;  %v445_v24 = vld [vmem:[%s4597_s9 + $0x580] sm:$0xff] }
  0xca   : > { %2501 = vmatpush1.bf16.msra.mxu0 %v4014_v39  ;;  %2544 = vmatpush1.bf16.msra.mxu1 %v4016_v40  ;;  %v284_v39 = vld [vmem:[%s4597_s9 + $0x78] sm:$0xff] }
  0xcb   : > { %2580 = vmatprep.subr.bf16.mxu0 %v3827_v42  ;;  %2623 = vmatprep.subr.bf16.mxu1 %v3829_v43  ;;  %v316_v40 = vld [vmem:[%s4597_s9 + $0x178] sm:$0xff]  ;;  %v4022_v42 = vcombine.low %v473_v29, %v505_v30  ;;  %v4024_v43 = vcombine.low %v474_v31, %v506_v32  ;;  %v3967_v29 = vcombine.high %v413_v23, %v445_v24  ;;  %v477_v31 = vld [vmem:[%s4597_s9 + $0x680] sm:$0xff] }
  0xcc   : > { %v3837_v45 = vcombine.high %v284_v39, %v316_v40  ;;  %v509_v32 = vld [vmem:[%s4597_s9 + $0x780] sm:$0xff] }
  0xcd   : > { %4070 = vmatmul.mubr.msk.bf16.vlgmr.msra.gmra.mrb[16].mxu0 %vm2146_vm0, %v4627_v41  ;;  %4071 = vmatmul.mubr.msk.bf16.vlgmr.msra.gmra.mrb[16].mxu1 %vm2146_vm0, %v4627_v41 }
  0xce   : > { %2581 = vmatpush1.bf16.msra.mxu0 %v3826_v48  ;;  %2624 = vmatpush1.bf16.msra.mxu1 %v3828_v49  ;;  %v348_v48 = vld [vmem:[%s4597_s9 + $0x278] sm:$0xff] }
  0xcf   : > { %2582 = vmatprep.subr.bf16.mxu0 %v3891_v50  ;;  %2625 = vmatprep.subr.bf16.mxu1 %v3893_v51  ;;  %v380_v49 = vld [vmem:[%s4597_s9 + $0x378] sm:$0xff]  ;;  %v3834_v50 = vcombine.low %v283_v37, %v315_v38  ;;  %v3836_v51 = vcombine.low %v284_v39, %v316_v40  ;;  %v4031_v37 = vcombine.high %v477_v31, %v509_v32  ;;  %v287_v39 = vld [vmem:[%s4597_s9 + $0x90] sm:$0xff] }
  0xd0   : > { %2612 = vmatprep.mubr.bf16.mxu0 %v4375_v0  ;;  %2655 = vmatprep.mubr.bf16.mxu1 %v4375_v0  ;;  %v3901_v53 = vcombine.high %v348_v48, %v380_v49  ;;  %v319_v40 = vld [vmem:[%s4597_s9 + $0x190] sm:$0xff] }
  0xd2   : > { %2583 = vmatpush1.bf16.msra.mxu0 %v3890_v56  ;;  %2626 = vmatpush1.bf16.msra.mxu1 %v3892_v57  ;;  %v412_v56 = vld [vmem:[%s4597_s9 + $0x478] sm:$0xff] }
  0xd3   : > { %2584 = vmatprep.subr.bf16.mxu0 %v3955_v58  ;;  %2627 = vmatprep.subr.bf16.mxu1 %v3957_v59  ;;  %v444_v57 = vld [vmem:[%s4597_s9 + $0x578] sm:$0xff]  ;;  %v3898_v58 = vcombine.low %v347_v46, %v379_v47  ;;  %v3900_v59 = vcombine.low %v348_v48, %v380_v49  ;;  %v3843_v46 = vcombine.high %v287_v39, %v319_v40  ;;  %v351_v48 = vld [vmem:[%s4597_s9 + $0x290] sm:$0xff] }
  0xd4   : > { %v3965_v61 = vcombine.high %v412_v56, %v444_v57  ;;  %v383_v49 = vld [vmem:[%s4597_s9 + $0x390] sm:$0xff] }
  0xd6   : > { %2585 = vmatpush1.bf16.msra.mxu0 %v3954_v1  ;;  %2628 = vmatpush1.bf16.msra.mxu1 %v3956_v2  ;;  %v476_v1 = vld [vmem:[%s4597_s9 + $0x678] sm:$0xff] }
  0xd7   : > { %2586 = vmatprep.subr.bf16.mxu0 %v4019_v3  ;;  %2629 = vmatprep.subr.bf16.mxu1 %v4021_v4  ;;  %v508_v2 = vld [vmem:[%s4597_s9 + $0x778] sm:$0xff]  ;;  %v3962_v3 = vcombine.low %v411_v54, %v443_v55  ;;  %v3964_v4 = vcombine.low %v412_v56, %v444_v57  ;;  %v3907_v54 = vcombine.high %v351_v48, %v383_v49  ;;  %v415_v56 = vld [vmem:[%s4597_s9 + $0x490] sm:$0xff] }
  0xd8   : > { %v4029_v6 = vcombine.high %v476_v1, %v508_v2  ;;  %v447_v57 = vld [vmem:[%s4597_s9 + $0x590] sm:$0xff] }
  0xda   : > { %2587 = vmatpush1.bf16.msra.mxu0 %v4018_v9  ;;  %2630 = vmatpush1.bf16.msra.mxu1 %v4020_v10  ;;  %v286_v9 = vld [vmem:[%s4597_s9 + $0x88] sm:$0xff] }
  0xdb   : > { %2666 = vmatprep.subr.bf16.mxu0 %v3831_v11  ;;  %2709 = vmatprep.subr.bf16.mxu1 %v3833_v12  ;;  %v318_v10 = vld [vmem:[%s4597_s9 + $0x188] sm:$0xff]  ;;  %v4026_v11 = vcombine.low %v475_v62, %v507_v63  ;;  %v4028_v12 = vcombine.low %v476_v1, %v508_v2  ;;  %v3971_v62 = vcombine.high %v415_v56, %v447_v57  ;;  %v479_v1 = vld [vmem:[%s4597_s9 + $0x690] sm:$0xff] }
  0xdc   : > { %v3841_v14 = vcombine.high %v286_v9, %v318_v10  ;;  %v511_v2 = vld [vmem:[%s4597_s9 + $0x790] sm:$0xff] }
  0xdd   : > { %4072 = vmatmul.mubr.msk.bf16.vlgmr.msra.gmra.mrb[20].mxu0 %vm2146_vm0, %v4627_v41  ;;  %4073 = vmatmul.mubr.msk.bf16.vlgmr.msra.gmra.mrb[20].mxu1 %vm2146_vm0, %v4627_v41 }
  0xde   : > { %2667 = vmatpush1.bf16.msra.mxu0 %v3830_v17  ;;  %2710 = vmatpush1.bf16.msra.mxu1 %v3832_v18  ;;  %v350_v17 = vld [vmem:[%s4597_s9 + $0x288] sm:$0xff] }
  0xdf   : > { %2668 = vmatprep.subr.bf16.mxu0 %v3895_v19  ;;  %2711 = vmatprep.subr.bf16.mxu1 %v3897_v20  ;;  %v382_v18 = vld [vmem:[%s4597_s9 + $0x388] sm:$0xff]  ;;  %v3838_v19 = vcombine.low %v285_v7, %v317_v8  ;;  %v3840_v20 = vcombine.low %v286_v9, %v318_v10  ;;  %v4035_v7 = vcombine.high %v479_v1, %v511_v2  ;;  %v289_v9 = vld [vmem:[%s4597_s9 + $0xa0] sm:$0xff] }
  0xe0   : > { %2698 = vmatprep.mubr.bf16.mxu0 %v4375_v0  ;;  %2741 = vmatprep.mubr.bf16.mxu1 %v4375_v0  ;;  %v3905_v22 = vcombine.high %v350_v17, %v382_v18  ;;  %v321_v10 = vld [vmem:[%s4597_s9 + $0x1a0] sm:$0xff] }
  0xe2   : > { %2669 = vmatpush1.bf16.msra.mxu0 %v3894_v25  ;;  %2712 = vmatpush1.bf16.msra.mxu1 %v3896_v26  ;;  %v414_v25 = vld [vmem:[%s4597_s9 + $0x488] sm:$0xff] }
  0xe3   : > { %2670 = vmatprep.subr.bf16.mxu0 %v3959_v27  ;;  %2713 = vmatprep.subr.bf16.mxu1 %v3961_v28  ;;  %v446_v26 = vld [vmem:[%s4597_s9 + $0x588] sm:$0xff]  ;;  %v3902_v27 = vcombine.low %v349_v15, %v381_v16  ;;  %v3904_v28 = vcombine.low %v350_v17, %v382_v18  ;;  %v3847_v15 = vcombine.high %v289_v9, %v321_v10  ;;  %v353_v17 = vld [vmem:[%s4597_s9 + $0x2a0] sm:$0xff] }
  0xe4   : > { %v3969_v30 = vcombine.high %v414_v25, %v446_v26  ;;  %v385_v18 = vld [vmem:[%s4597_s9 + $0x3a0] sm:$0xff] }
  0xe6   : > { %2671 = vmatpush1.bf16.msra.mxu0 %v3958_v33  ;;  %2714 = vmatpush1.bf16.msra.mxu1 %v3960_v34  ;;  %v478_v33 = vld [vmem:[%s4597_s9 + $0x688] sm:$0xff] }
  0xe7   : > { %2672 = vmatprep.subr.bf16.mxu0 %v4023_v35  ;;  %2715 = vmatprep.subr.bf16.mxu1 %v4025_v36  ;;  %v510_v34 = vld [vmem:[%s4597_s9 + $0x788] sm:$0xff]  ;;  %v3966_v35 = vcombine.low %v413_v23, %v445_v24  ;;  %v3968_v36 = vcombine.low %v414_v25, %v446_v26  ;;  %v3911_v23 = vcombine.high %v353_v17, %v385_v18  ;;  %v417_v25 = vld [vmem:[%s4597_s9 + $0x4a0] sm:$0xff] }
  0xe8   : > { %v4033_v38 = vcombine.high %v478_v33, %v510_v34  ;;  %v449_v26 = vld [vmem:[%s4597_s9 + $0x5a0] sm:$0xff] }
  0xea   : > { %2673 = vmatpush1.bf16.msra.mxu0 %v4022_v42  ;;  %2716 = vmatpush1.bf16.msra.mxu1 %v4024_v43  ;;  %v288_v42 = vld [vmem:[%s4597_s9 + $0x98] sm:$0xff] }
  0xeb   : > { %2752 = vmatprep.subr.bf16.mxu0 %v3835_v44  ;;  %2795 = vmatprep.subr.bf16.mxu1 %v3837_v45  ;;  %v320_v43 = vld [vmem:[%s4597_s9 + $0x198] sm:$0xff]  ;;  %v4030_v44 = vcombine.low %v477_v31, %v509_v32  ;;  %v4032_v45 = vcombine.low %v478_v33, %v510_v34  ;;  %v3975_v31 = vcombine.high %v417_v25, %v449_v26  ;;  %v481_v33 = vld [vmem:[%s4597_s9 + $0x6a0] sm:$0xff] }
  0xec   : > { %v3845_v47 = vcombine.high %v288_v42, %v320_v43  ;;  %v513_v34 = vld [vmem:[%s4597_s9 + $0x7a0] sm:$0xff] }
  0xed   : > { %4074 = vmatmul.mubr.msk.bf16.vlgmr.msra.gmra.mrb[24].mxu0 %vm2146_vm0, %v4627_v41  ;;  %4075 = vmatmul.mubr.msk.bf16.vlgmr.msra.gmra.mrb[24].mxu1 %vm2146_vm0, %v4627_v41 }
  0xee   : > { %2753 = vmatpush1.bf16.msra.mxu0 %v3834_v50  ;;  %2796 = vmatpush1.bf16.msra.mxu1 %v3836_v51  ;;  %v352_v50 = vld [vmem:[%s4597_s9 + $0x298] sm:$0xff] }
  0xef   : > { %2754 = vmatprep.subr.bf16.mxu0 %v3899_v52  ;;  %2797 = vmatprep.subr.bf16.mxu1 %v3901_v53  ;;  %v384_v51 = vld [vmem:[%s4597_s9 + $0x398] sm:$0xff]  ;;  %v3842_v52 = vcombine.low %v287_v39, %v319_v40  ;;  %v3844_v53 = vcombine.low %v288_v42, %v320_v43  ;;  %v291_v40 = vld [vmem:[%s4597_s9 + $0xb0] sm:$0xff] }
  0xf0   : > { %2784 = vmatprep.mubr.bf16.mxu0 %v4375_v0  ;;  %2827 = vmatprep.mubr.bf16.mxu1 %v4375_v0  ;;  %v3909_v55 = vcombine.high %v352_v50, %v384_v51  ;;  %v323_v42 = vld [vmem:[%s4597_s9 + $0x1b0] sm:$0xff]  ;;  %v292_v43 = vld [vmem:[%s4597_s9 + $0xb8] sm:$0xff] }
  0xf2   : > { %2755 = vmatpush1.bf16.msra.mxu0 %v3898_v58  ;;  %2798 = vmatpush1.bf16.msra.mxu1 %v3900_v59  ;;  %v416_v58 = vld [vmem:[%s4597_s9 + $0x498] sm:$0xff] }
  0xf3   : > { %2756 = vmatprep.subr.bf16.mxu0 %v3963_v60  ;;  %2799 = vmatprep.subr.bf16.mxu1 %v3965_v61  ;;  %v448_v59 = vld [vmem:[%s4597_s9 + $0x598] sm:$0xff]  ;;  %v3906_v60 = vcombine.low %v351_v48, %v383_v49  ;;  %v3908_v61 = vcombine.low %v352_v50, %v384_v51  ;;  %v355_v49 = vld [vmem:[%s4597_s9 + $0x2b0] sm:$0xff] }
  0xf4   : > { %v3973_v63 = vcombine.high %v416_v58, %v448_v59  ;;  %v387_v50 = vld [vmem:[%s4597_s9 + $0x3b0] sm:$0xff]  ;;  %v356_v51 = vld [vmem:[%s4597_s9 + $0x2b8] sm:$0xff] }
  0xf6   : > { %2757 = vmatpush1.bf16.msra.mxu0 %v3962_v3  ;;  %2800 = vmatpush1.bf16.msra.mxu1 %v3964_v4  ;;  %v480_v3 = vld [vmem:[%s4597_s9 + $0x698] sm:$0xff] }
  0xf7   : > { %2758 = vmatprep.subr.bf16.mxu0 %v4027_v5  ;;  %2801 = vmatprep.subr.bf16.mxu1 %v4029_v6  ;;  %v512_v4 = vld [vmem:[%s4597_s9 + $0x798] sm:$0xff]  ;;  %v3970_v5 = vcombine.low %v415_v56, %v447_v57  ;;  %v3972_v6 = vcombine.low %v416_v58, %v448_v59  ;;  %v419_v57 = vld [vmem:[%s4597_s9 + $0x4b0] sm:$0xff] }
  0xf8   : > { %v4037_v8 = vcombine.high %v480_v3, %v512_v4  ;;  %v451_v58 = vld [vmem:[%s4597_s9 + $0x5b0] sm:$0xff]  ;;  %v4853_v59 = vld [vmem:[#allocation2] sm:$0xff]  }
  0xfa   : > { %2759 = vmatpush1.bf16.msra.mxu0 %v4026_v11  ;;  %2802 = vmatpush1.bf16.msra.mxu1 %v4028_v12  ;;  %v290_v11 = vld [vmem:[%s4597_s9 + $0xa8] sm:$0xff] }
  0xfb   : > { %2838 = vmatprep.subr.bf16.mxu0 %v3839_v13  ;;  %2881 = vmatprep.subr.bf16.mxu1 %v3841_v14  ;;  %v322_v12 = vld [vmem:[%s4597_s9 + $0x1a8] sm:$0xff]  ;;  %v4034_v13 = vcombine.low %v479_v1, %v511_v2  ;;  %v4036_v14 = vcombine.low %v480_v3, %v512_v4  ;;  %v3979_v1 = vcombine.high %v419_v57, %v451_v58  ;;  %v483_v3 = vld [vmem:[%s4597_s9 + $0x6b0] sm:$0xff] }
  0xfc   : > { %v3849_v16 = vcombine.high %v290_v11, %v322_v12  ;;  %v515_v4 = vld [vmem:[%s4597_s9 + $0x7b0] sm:$0xff] }
  0xfd   : > { %4076 = vmatmul.mubr.msk.bf16.vlgmr.msra.gmra.mrb[28].mxu0 %vm2146_vm0, %v4627_v41  ;;  %4077 = vmatmul.mubr.msk.bf16.vlgmr.msra.gmra.mrb[28].mxu1 %vm2146_vm0, %v4627_v41 }
  0xfe   : > { %2839 = vmatpush1.bf16.msra.mxu0 %v3838_v19  ;;  %2882 = vmatpush1.bf16.msra.mxu1 %v3840_v20  ;;  %v354_v19 = vld [vmem:[%s4597_s9 + $0x2a8] sm:$0xff] }
  0xff   : > { %2840 = vmatprep.subr.bf16.mxu0 %v3903_v21  ;;  %2883 = vmatprep.subr.bf16.mxu1 %v3905_v22  ;;  %v386_v20 = vld [vmem:[%s4597_s9 + $0x3a8] sm:$0xff]  ;;  %v3846_v21 = vcombine.low %v289_v9, %v321_v10  ;;  %v3848_v22 = vcombine.low %v290_v11, %v322_v12  ;;  %v4043_v9 = vcombine.high %v483_v3, %v515_v4  ;;  %v293_v11 = vld [vmem:[%s4597_s9 + $0xc0] sm:$0xff] }
 0x100   : > { %2870 = vmatprep.mubr.bf16.mxu0 %v4375_v0  ;;  %2913 = vmatprep.mubr.bf16.mxu1 %v4375_v0  ;;  %v3913_v24 = vcombine.high %v354_v19, %v386_v20  ;;  %v325_v12 = vld [vmem:[%s4597_s9 + $0x1c0] sm:$0xff] }
 0x102   : > { %2841 = vmatpush1.bf16.msra.mxu0 %v3902_v27  ;;  %2884 = vmatpush1.bf16.msra.mxu1 %v3904_v28  ;;  %v418_v27 = vld [vmem:[%s4597_s9 + $0x4a8] sm:$0xff] }
 0x103   : > { %2842 = vmatprep.subr.bf16.mxu0 %v3967_v29  ;;  %2885 = vmatprep.subr.bf16.mxu1 %v3969_v30  ;;  %v450_v28 = vld [vmem:[%s4597_s9 + $0x5a8] sm:$0xff]  ;;  %v3910_v29 = vcombine.low %v353_v17, %v385_v18  ;;  %v3912_v30 = vcombine.low %v354_v19, %v386_v20  ;;  %v3855_v17 = vcombine.high %v293_v11, %v325_v12  ;;  %v357_v19 = vld [vmem:[%s4597_s9 + $0x2c0] sm:$0xff] }
 0x104   : > { %v3977_v32 = vcombine.high %v418_v27, %v450_v28  ;;  %v389_v20 = vld [vmem:[%s4597_s9 + $0x3c0] sm:$0xff] }
 0x106   : > { %2843 = vmatpush1.bf16.msra.mxu0 %v3966_v35  ;;  %2886 = vmatpush1.bf16.msra.mxu1 %v3968_v36  ;;  %v482_v35 = vld [vmem:[%s4597_s9 + $0x6a8] sm:$0xff] }
 0x107   : > { %2844 = vmatprep.subr.bf16.mxu0 %v4031_v37  ;;  %2887 = vmatprep.subr.bf16.mxu1 %v4033_v38  ;;  %v514_v36 = vld [vmem:[%s4597_s9 + $0x7a8] sm:$0xff]  ;;  %v3976_v37 = vcombine.low %v418_v27, %v450_v28  ;;  %v4039_v38 = vcombine.high %v481_v33, %v513_v34  ;;  %v421_v27 = vld [vmem:[%s4597_s9 + $0x4c0] sm:$0xff] }
 0x108   : > { %v4041_v39 = vcombine.high %v482_v35, %v514_v36  ;;  %v453_v28 = vld [vmem:[%s4597_s9 + $0x5c0] sm:$0xff] }
 0x10a   : > { %2845 = vmatpush1.bf16.msra.mxu0 %v4030_v44  ;;  %2888 = vmatpush1.bf16.msra.mxu1 %v4032_v45  ;;  %v324_v44 = vld [vmem:[%s4597_s9 + $0x1b8] sm:$0xff]  ;;  %v4038_v45 = vcombine.low %v481_v33, %v513_v34  ;;  %v3983_v33 = vcombine.high %v421_v27, %v453_v28 }
 0x10b   : > { %2924 = vmatprep.subr.bf16.mxu0 %v3843_v46  ;;  %2967 = vmatprep.subr.bf16.mxu1 %v3845_v47  ;;  %v4040_v46 = vcombine.low %v482_v35, %v514_v36  ;;  %v3851_v47 = vcombine.high %v291_v40, %v323_v42  ;;  %v3853_v48 = vcombine.high %v292_v43, %v324_v44  ;;  %v485_v35 = vld [vmem:[%s4597_s9 + $0x6c0] sm:$0xff] }
 0x10c   : > { %v517_v36 = vld [vmem:[%s4597_s9 + $0x7c0] sm:$0xff] }
 0x10d   : > { %4078 = vmatmul.mubr.msk.bf16.vlgmr.msra.gmra.mrb[32].mxu0 %vm2146_vm0, %v4627_v41  ;;  %4079 = vmatmul.mubr.msk.bf16.vlgmr.msra.gmra.mrb[32].mxu1 %vm2146_vm0, %v4627_v41 }
 0x10e   : > { %2925 = vmatpush1.bf16.msra.mxu0 %v3842_v52  ;;  %2968 = vmatpush1.bf16.msra.mxu1 %v3844_v53  ;;  %v388_v52 = vld [vmem:[%s4597_s9 + $0x3b8] sm:$0xff]  ;;  %v3850_v53 = vcombine.low %v291_v40, %v323_v42  ;;  %v4047_v40 = vcombine.high %v485_v35, %v517_v36 }
 0x10f   : > { %2926 = vmatprep.subr.bf16.mxu0 %v3907_v54  ;;  %2969 = vmatprep.subr.bf16.mxu1 %v3909_v55  ;;  %v3852_v54 = vcombine.low %v292_v43, %v324_v44  ;;  %v3915_v55 = vcombine.high %v355_v49, %v387_v50  ;;  %v3917_v56 = vcombine.high %v356_v51, %v388_v52  ;;  %v295_v43 = vld [vmem:[%s4597_s9 + $0xd0] sm:$0xff] }
 0x110   : > { %2956 = vmatprep.mubr.bf16.mxu0 %v4375_v0  ;;  %2999 = vmatprep.mubr.bf16.mxu1 %v4375_v0  ;;  %v327_v44 = vld [vmem:[%s4597_s9 + $0x1d0] sm:$0xff] }
 0x112   : > { %2927 = vmatpush1.bf16.msra.mxu0 %v3906_v60  ;;  %2970 = vmatpush1.bf16.msra.mxu1 %v3908_v61  ;;  %v420_v60 = vld [vmem:[%s4597_s9 + $0x4b8] sm:$0xff] }
 0x113   : > { %2928 = vmatprep.subr.bf16.mxu0 %v3971_v62  ;;  %2971 = vmatprep.subr.bf16.mxu1 %v3973_v63  ;;  %v452_v61 = vld [vmem:[%s4597_s9 + $0x5b8] sm:$0xff]  ;;  %v3914_v62 = vcombine.low %v355_v49, %v387_v50  ;;  %v3916_v63 = vcombine.low %v356_v51, %v388_v52  ;;  %v3859_v49 = vcombine.high %v295_v43, %v327_v44  ;;  %v359_v51 = vld [vmem:[%s4597_s9 + $0x2d0] sm:$0xff] }
 0x114   : > { %v3981_v2 = vcombine.high %v420_v60, %v452_v61  ;;  %v391_v52 = vld [vmem:[%s4597_s9 + $0x3d0] sm:$0xff] }
 0x116   : > { %2929 = vmatpush1.bf16.msra.mxu0 %v3970_v5  ;;  %2972 = vmatpush1.bf16.msra.mxu1 %v3972_v6  ;;  %v484_v5 = vld [vmem:[%s4597_s9 + $0x6b8] sm:$0xff] }
 0x117   : > { %2930 = vmatprep.subr.bf16.mxu0 %v4035_v7  ;;  %2973 = vmatprep.subr.bf16.mxu1 %v4037_v8  ;;  %v516_v6 = vld [vmem:[%s4597_s9 + $0x7b8] sm:$0xff]  ;;  %v3978_v7 = vcombine.low %v419_v57, %v451_v58  ;;  %v3980_v8 = vcombine.low %v420_v60, %v452_v61  ;;  %v3923_v57 = vcombine.high %v359_v51, %v391_v52  ;;  %v423_v60 = vld [vmem:[%s4597_s9 + $0x4d0] sm:$0xff] }
 0x118   : > { %v4045_v10 = vcombine.high %v484_v5, %v516_v6  ;;  %v455_v61 = vld [vmem:[%s4597_s9 + $0x5d0] sm:$0xff] }
 0x11a   : > { %2931 = vmatpush1.bf16.msra.mxu0 %v4034_v13  ;;  %2974 = vmatpush1.bf16.msra.mxu1 %v4036_v14  ;;  %v294_v13 = vld [vmem:[%s4597_s9 + $0xc8] sm:$0xff] }
 0x11b   : > { %3010 = vmatprep.subr.bf16.mxu0 %v3847_v15  ;;  %3053 = vmatprep.subr.bf16.mxu1 %v3849_v16  ;;  %v326_v14 = vld [vmem:[%s4597_s9 + $0x1c8] sm:$0xff]  ;;  %v4042_v15 = vcombine.low %v483_v3, %v515_v4  ;;  %v4044_v16 = vcombine.low %v484_v5, %v516_v6  ;;  %v3987_v3 = vcombine.high %v423_v60, %v455_v61  ;;  %v487_v5 = vld [vmem:[%s4597_s9 + $0x6d0] sm:$0xff] }
 0x11c   : > { %v3857_v18 = vcombine.high %v294_v13, %v326_v14  ;;  %v519_v6 = vld [vmem:[%s4597_s9 + $0x7d0] sm:$0xff] }
 0x11d   : > { %4080 = vmatmul.mubr.msk.bf16.vlgmr.msra.gmra.mrb[36].mxu0 %vm2146_vm0, %v4627_v41  ;;  %4081 = vmatmul.mubr.msk.bf16.vlgmr.msra.gmra.mrb[36].mxu1 %vm2146_vm0, %v4627_v41  ;;  %v3974_v41 = vcombine.low %v417_v25, %v449_v26  ;;  %v3919_v25 = vcombine.high %v357_v19, %v389_v20 }
 0x11e   : > { %3011 = vmatpush1.bf16.msra.mxu0 %v3846_v21  ;;  %3054 = vmatpush1.bf16.msra.mxu1 %v3848_v22  ;;  %v358_v21 = vld [vmem:[%s4597_s9 + $0x2c8] sm:$0xff] }
 0x11f   : > { %3012 = vmatprep.subr.bf16.mxu0 %v3911_v23  ;;  %3055 = vmatprep.subr.bf16.mxu1 %v3913_v24  ;;  %v390_v22 = vld [vmem:[%s4597_s9 + $0x3c8] sm:$0xff]  ;;  %v3854_v23 = vcombine.low %v293_v11, %v325_v12  ;;  %v3856_v24 = vcombine.low %v294_v13, %v326_v14  ;;  %v4051_v12 = vcombine.high %v487_v5, %v519_v6  ;;  %v297_v14 = vld [vmem:[%s4597_s9 + $0xe0] sm:$0xff] }
 0x120   : > { %3042 = vmatprep.mubr.bf16.mxu0 %v4375_v0  ;;  %3085 = vmatprep.mubr.bf16.mxu1 %v4375_v0  ;;  %v3921_v26 = vcombine.high %v358_v21, %v390_v22 }
 0x122   : > { %3013 = vmatpush1.bf16.msra.mxu0 %v3910_v29  ;;  %3056 = vmatpush1.bf16.msra.mxu1 %v3912_v30  ;;  %v422_v29 = vld [vmem:[%s4597_s9 + $0x4c8] sm:$0xff] }
 0x123   : > { %3014 = vmatprep.subr.bf16.mxu0 %v3975_v31  ;;  %3057 = vmatprep.subr.bf16.mxu1 %v3977_v32  ;;  %v454_v30 = vld [vmem:[%s4597_s9 + $0x5c8] sm:$0xff]  ;;  %v3918_v31 = vcombine.low %v357_v19, %v389_v20  ;;  %v3920_v32 = vcombine.low %v358_v21, %v390_v22  ;;  %v4050_v19 = vcombine.low %v487_v5, %v519_v6 }
 0x124   : > { %v3985_v34 = vcombine.high %v422_v29, %v454_v30 }
 0x126   : > { %3015 = vmatpush1.bf16.msra.mxu0 %v3974_v41  ;;  %3058 = vmatpush1.bf16.msra.mxu1 %v3976_v37  ;;  %v486_v41 = vld [vmem:[%s4597_s9 + $0x6c8] sm:$0xff] }
 0x127   : > { %3016 = vmatprep.subr.bf16.mxu0 %v4039_v38  ;;  %3059 = vmatprep.subr.bf16.mxu1 %v4041_v39  ;;  %v518_v37 = vld [vmem:[%s4597_s9 + $0x7c8] sm:$0xff]  ;;  %v3982_v38 = vcombine.low %v421_v27, %v453_v28  ;;  %v3984_v39 = vcombine.low %v422_v29, %v454_v30  ;;  %v4928_v29 = vld [vmem:[%s4925_s30] sm:$0xff] }
 0x128   : > { %v4049_v42 = vcombine.high %v486_v41, %v518_v37  ;;  %v394_v27 = vld [vmem:[%s4597_s9 + $0x3e8] sm:$0xff] }
 0x12a   : > { %3017 = vmatpush1.bf16.msra.mxu0 %v4038_v45  ;;  %3060 = vmatpush1.bf16.msra.mxu1 %v4040_v46  ;;  %v296_v45 = vld [vmem:[%s4597_s9 + $0xd8] sm:$0xff] }
 0x12b   : > { %3096 = vmatprep.subr.bf16.mxu0 %v3851_v47  ;;  %3139 = vmatprep.subr.bf16.mxu1 %v3853_v48  ;;  %v328_v46 = vld [vmem:[%s4597_s9 + $0x1d8] sm:$0xff]  ;;  %v4046_v47 = vcombine.low %v485_v35, %v517_v36  ;;  %v4048_v48 = vcombine.low %v486_v41, %v518_v37  ;;  %v425_v36 = vld [vmem:[%s4597_s9 + $0x4e0] sm:$0xff] }
 0x12c   : > { %v3861_v50 = vcombine.high %v296_v45, %v328_v46  ;;  %v457_v41 = vld [vmem:[%s4597_s9 + $0x5e0] sm:$0xff] }
 0x12d   : > { %4082 = vmatmul.mubr.msk.bf16.vlgmr.msra.gmra.mrb[40].mxu0 %vm2146_vm0, %v4853_v59  ;;  %4083 = vmatmul.mubr.msk.bf16.vlgmr.msra.gmra.mrb[40].mxu1 %vm2146_vm0, %v4853_v59 }
 0x12e   : > { %3097 = vmatpush1.bf16.msra.mxu0 %v3850_v53  ;;  %3140 = vmatpush1.bf16.msra.mxu1 %v3852_v54  ;;  %v360_v53 = vld [vmem:[%s4597_s9 + $0x2d8] sm:$0xff] }
 0x12f   : > { %3098 = vmatprep.subr.bf16.mxu0 %v3915_v55  ;;  %3141 = vmatprep.subr.bf16.mxu1 %v3917_v56  ;;  %v392_v54 = vld [vmem:[%s4597_s9 + $0x3d8] sm:$0xff]  ;;  %v3858_v55 = vcombine.low %v295_v43, %v327_v44  ;;  %v3860_v56 = vcombine.low %v296_v45, %v328_v46  ;;  %v3991_v46 = vcombine.high %v425_v36, %v457_v41 }
 0x130   : > { %3128 = vmatprep.mubr.bf16.mxu0 %v4375_v0  ;;  %3171 = vmatprep.mubr.bf16.mxu1 %v4375_v0  ;;  %v3925_v58 = vcombine.high %v360_v53, %v392_v54 }
 0x132   : > { %3099 = vmatpush1.bf16.msra.mxu0 %v3914_v62  ;;  %3142 = vmatpush1.bf16.msra.mxu1 %v3916_v63  ;;  %v424_v62 = vld [vmem:[%s4597_s9 + $0x4d8] sm:$0xff] }
 0x133   : > { %3100 = vmatprep.subr.bf16.mxu0 %v3979_v1  ;;  %3143 = vmatprep.subr.bf16.mxu1 %v3981_v2  ;;  %v456_v63 = vld [vmem:[%s4597_s9 + $0x5d8] sm:$0xff]  ;;  %v3922_v1 = vcombine.low %v359_v51, %v391_v52  ;;  %v3924_v2 = vcombine.low %v360_v53, %v392_v54  ;;  %v490_v54 = vld [vmem:[%s4597_s9 + $0x6e8] sm:$0xff] }
 0x134   : > { %v3989_v4 = vcombine.high %v424_v62, %v456_v63  ;;  %v3988_v11 = vcombine.low %v424_v62, %v456_v63 }
 0x136   : > { %3101 = vmatpush1.bf16.msra.mxu0 %v3978_v7  ;;  %3144 = vmatpush1.bf16.msra.mxu1 %v3980_v8  ;;  %v488_v7 = vld [vmem:[%s4597_s9 + $0x6d8] sm:$0xff] }
 0x137   : > { %3102 = vmatprep.subr.bf16.mxu0 %v4043_v9  ;;  %3145 = vmatprep.subr.bf16.mxu1 %v4045_v10  ;;  %v520_v8 = vld [vmem:[%s4597_s9 + $0x7d8] sm:$0xff]  ;;  %v541_v9 = vlaneseq  ;;  %v3986_v10 = vcombine.low %v423_v60, %v455_v61  ;;  %v3990_v61 = vcombine.low %v425_v36, %v457_v41  ;;  %v427_v36 = vld [vmem:[%s4597_s9 + $0x4f0] sm:$0xff] }
 0x138   : > { %v4053_v13 = vcombine.high %v488_v7, %v520_v8  ;;  %v4052_v20 = vcombine.low %v488_v7, %v520_v8  ;;  %v459_v41 = vld [vmem:[%s4597_s9 + $0x5f0] sm:$0xff] }
 0x13a   : > { %3103 = vmatpush1.bf16.msra.mxu0 %v4042_v15  ;;  %3146 = vmatpush1.bf16.msra.mxu1 %v4044_v16  ;;  %v329_v15 = vld [vmem:[%s4597_s9 + $0x1e0] sm:$0xff]  ;;  %v298_v16 = vld [vmem:[%s4597_s9 + $0xe8] sm:$0xff] }
 0x13b   : > { %3182 = vmatprep.subr.bf16.mxu0 %v3855_v17  ;;  %3225 = vmatprep.subr.bf16.mxu1 %v3857_v18  ;;  %v330_v17 = vld [vmem:[%s4597_s9 + $0x1e8] sm:$0xff]  ;;  %v4916_v18 = vshrl.u32 %v541_v9, 7  ;;  %v3863_v21 = vcombine.high %v297_v14, %v329_v15  ;;  %v3862_v28 = vcombine.low %v297_v14, %v329_v15  ;;  %v299_v9 = vld [vmem:[%s4597_s9 + $0xf0] sm:$0xff] }
 0x13c   : > { %v3865_v22 = vcombine.high %v298_v16, %v330_v17 }
 0x13d   : > { %4084 = vmatmul.mubr.msk.bf16.vlgmr.msra.gmra.mrb[44].mxu0 %vm2146_vm0, %v4853_v59  ;;  %4085 = vmatmul.mubr.msk.bf16.vlgmr.msra.gmra.mrb[44].mxu1 %vm2146_vm0, %v4853_v59  ;;  %v4931_v30 = vsub.s32 2, %v4916_v18 }
 0x13e   : > { %3183 = vmatpush1.bf16.msra.mxu0 %v3854_v23  ;;  %3226 = vmatpush1.bf16.msra.mxu1 %v3856_v24  ;;  %v361_v23 = vld [vmem:[%s4597_s9 + $0x2e0] sm:$0xff] }
 0x13f   : > { %3184 = vmatprep.subr.bf16.mxu0 %v3919_v25  ;;  %3227 = vmatprep.subr.bf16.mxu1 %v3921_v26  ;;  %v393_v24 = vld [vmem:[%s4597_s9 + $0x3e0] sm:$0xff]  ;;  %v4921_v25 = vsub.s32 0, %v4916_v18  ;;  %v362_v26 = vld [vmem:[%s4597_s9 + $0x2e8] sm:$0xff] }
 0x140   : > { %3214 = vmatprep.mubr.bf16.mxu0 %v4375_v0  ;;  %3257 = vmatprep.mubr.bf16.mxu1 %v4375_v0  ;;  %v3929_v35 = vcombine.high %v362_v26, %v394_v27  ;;  %v3926_v43 = vcombine.low %v361_v23, %v393_v24  ;;  %v3928_v45 = vcombine.low %v362_v26, %v394_v27  ;;  %v4986_v26 = vsub.s32 6, %v4916_v18 }
 0x141   : > { %v544_v37 = vrot.slane %v4928_v29, %v4921_v25  ;;  %v4989_v27 = vsub.s32 5, %v4916_v18 }
 0x142   : > { %3185 = vmatpush1.bf16.msra.mxu0 %v3918_v31  ;;  %3228 = vmatpush1.bf16.msra.mxu1 %v3920_v32  ;;  %v4934_v31 = vsub.s32 1, %v4916_v18  ;;  %v3864_v32 = vcombine.low %v298_v16, %v330_v17 }
 0x143   : > { %3186 = vmatprep.subr.bf16.mxu0 %v3983_v33  ;;  %3229 = vmatprep.subr.bf16.mxu1 %v3985_v34  ;;  %v4937_v33 = vsub.s32 3, %v4916_v18  ;;  %v3927_v34 = vcombine.high %v361_v23, %v393_v24  ;;  %v396_v23 = vld [vmem:[%s4597_s9 + $0x3f8] sm:$0xff] }
 0x145   : > { %v556_v44 = vrot.slane %v4928_v29, %v4937_v33 }
 0x146   : > { %3187 = vmatpush1.bf16.msra.mxu0 %v3982_v38  ;;  %3230 = vmatpush1.bf16.msra.mxu1 %v3984_v39  ;;  %v426_v38 = vld [vmem:[%s4597_s9 + $0x4e8] sm:$0xff] }
 0x147   : > { %3188 = vmatprep.subr.bf16.mxu0 %v4047_v40  ;;  %3231 = vmatprep.subr.bf16.mxu1 %v4049_v42  ;;  %v458_v39 = vld [vmem:[%s4597_s9 + $0x5e8] sm:$0xff]  ;;  %v552_v40 = vrot.slane %v4928_v29, %v4931_v30  ;;  %v548_v42 = vrot.slane %v4928_v29, %v4934_v31 }
 0x148   : > { %v3992_v62 = vcombine.low %v426_v38, %v458_v39 }
 0x14a   : > { %3189 = vmatpush1.bf16.msra.mxu0 %v4046_v47  ;;  %3232 = vmatpush1.bf16.msra.mxu1 %v4048_v48  ;;  %v3993_v48 = vcombine.high %v426_v38, %v458_v39  ;;  %v428_v38 = vld [vmem:[%s4597_s9 + $0x4f8] sm:$0xff] }
 0x14b   : > { %3268 = vmatprep.subr.bf16.mxu0 %v3859_v49  ;;  %3311 = vmatprep.subr.bf16.mxu1 %v3861_v50  ;;  %v489_v49 = vld [vmem:[%s4597_s9 + $0x6e0] sm:$0xff]  ;;  %v460_v39 = vld [vmem:[%s4597_s9 + $0x5f8] sm:$0xff] }
 0x14c   : > { %v521_v50 = vld [vmem:[%s4597_s9 + $0x7e0] sm:$0xff] }
 0x14d   : > { %4086 = vmatmul.mubr.msk.bf16.vlgmr.msra.gmra.mrb[48].mxu0 %vm2146_vm0, %v4853_v59  ;;  %4087 = vmatmul.mubr.msk.bf16.vlgmr.msra.gmra.mrb[48].mxu1 %vm2146_vm0, %v4853_v59  ;;  %v4054_v14 = vcombine.low %v489_v49, %v521_v50 }
 0x14e   : > { %3269 = vmatpush1.bf16.msra.mxu0 %v3858_v55  ;;  %3312 = vmatpush1.bf16.msra.mxu1 %v3860_v56  ;;  %v522_v55 = vld [vmem:[%s4597_s9 + $0x7e8] sm:$0xff] }
 0x14f   : > { %3270 = vmatprep.subr.bf16.mxu0 %v3923_v57  ;;  %3313 = vmatprep.subr.bf16.mxu1 %v3925_v58  ;;  %v4057_v8 = vcombine.high %v490_v54, %v522_v55  ;;  %v4056_v15 = vcombine.low %v490_v54, %v522_v55  ;;  %v524_v54 = vld [vmem:[%s4597_s9 + $0x7f8] sm:$0xff] }
 0x150   : > { %3300 = vmatprep.mubr.bf16.mxu0 %v4375_v0  ;;  %3343 = vmatprep.mubr.bf16.mxu1 %v4375_v0 }
 0x152   : > { %3271 = vmatpush1.bf16.msra.mxu0 %v3922_v1  ;;  %3314 = vmatpush1.bf16.msra.mxu1 %v3924_v2 }
 0x153   : > { %3272 = vmatprep.subr.bf16.mxu0 %v3987_v3  ;;  %3315 = vmatprep.subr.bf16.mxu1 %v3989_v4  ;;  %v4055_v4 = vcombine.high %v489_v49, %v521_v50  ;;  %v523_v49 = vld [vmem:[%s4597_s9 + $0x7f0] sm:$0xff] }
 0x156   : > { %3273 = vmatpush1.bf16.msra.mxu0 %v3986_v10  ;;  %3316 = vmatpush1.bf16.msra.mxu1 %v3988_v11  ;;  %v331_v10 = vld [vmem:[%s4597_s9 + $0x1f0] sm:$0xff] }
 0x157   : > { %3274 = vmatprep.subr.bf16.mxu0 %v4051_v12  ;;  %3317 = vmatprep.subr.bf16.mxu1 %v4053_v13  ;;  %v300_v12 = vld [vmem:[%s4597_s9 + $0xf8] sm:$0xff]  ;;  %v3867_v16 = vcombine.high %v299_v9, %v331_v10  ;;  %v3866_v24 = vcombine.low %v299_v9, %v331_v10  ;;  %v526_v9 = vld [vmem:[%s4925_s30 + $0x8] sm:$0xff] }
 0x158   : > { %v332_v13 = vld [vmem:[%s4597_s9 + $0x1f8] sm:$0xff]  ;;  %v576_v10 = vrot.slane %v526_v9, %v4921_v25 }
 0x159   : > { %v3869_v17 = vcombine.high %v300_v12, %v332_v13 }
 0x15a   : > { %3275 = vmatpush1.bf16.msra.mxu0 %v4050_v19  ;;  %3318 = vmatpush1.bf16.msra.mxu1 %v4052_v20  ;;  %v363_v19 = vld [vmem:[%s4597_s9 + $0x2f0] sm:$0xff] }
 0x15b   : > { %3354 = vmatprep.subr.bf16.mxu0 %v3863_v21  ;;  %3397 = vmatprep.subr.bf16.mxu1 %v3865_v22  ;;  %v395_v20 = vld [vmem:[%s4597_s9 + $0x3f0] sm:$0xff]  ;;  %v4981_v21 = vsub.s32 4, %v4916_v18  ;;  %v364_v22 = vld [vmem:[%s4597_s9 + $0x2f8] sm:$0xff] }
 0x15d   : > { %4088 = vmatmul.mubr.msk.bf16.vlgmr.msra.gmra.mrb[52].mxu0 %vm2146_vm0, %v4853_v59  ;;  %4089 = vmatmul.mubr.msk.bf16.vlgmr.msra.gmra.mrb[52].mxu1 %vm2146_vm0, %v4853_v59 }
 0x15e   : > { %3355 = vmatpush1.bf16.msra.mxu0 %v3862_v28  ;;  %3398 = vmatpush1.bf16.msra.mxu1 %v3864_v32  ;;  %v3868_v28 = vcombine.low %v300_v12, %v332_v13  ;;  %v4992_v32 = vsub.s32 7, %v4916_v18  ;;  %v568_v18 = vrot.slane %v4928_v29, %v4986_v26  ;;  %v580_v12 = vrot.slane %v526_v9, %v4934_v31 }
 0x15f   : > { %3356 = vmatprep.subr.bf16.mxu0 %v3927_v34  ;;  %3399 = vmatprep.subr.bf16.mxu1 %v3929_v35  ;;  %v3931_v34 = vcombine.high %v363_v19, %v395_v20  ;;  %v3933_v35 = vcombine.high %v364_v22, %v396_v23  ;;  %v588_v13 = vrot.slane %v526_v9, %v4937_v33 }
 0x160   : > { %v2184_v47 = vpop.f32.mrb[0].mxu0  ;;  %3386 = vmatprep.mubr.bf16.mxu0 %v4375_v0  ;;  %v2227_v52 = vpop.f32.mrb[0].mxu1  ;;  %3429 = vmatprep.mubr.bf16.mxu1 %v4375_v0 }
 0x161   : > { %v2185_v51 = vadd.f32 %v2184_v47, %v544_v37  ;;  %v2186_v53 = vpop.f32.mrb[1].mxu0  ;;  %v2228_v56 = vadd.f32 %v2227_v52, %v552_v40  ;;  %v2229_v58 = vpop.f32.mrb[1].mxu1  ;;  %v3997_v47 = vcombine.high %v428_v38, %v460_v39 }
 0x162   : > { %v2187_v57 = vadd.f32 %v2186_v53, %v548_v42  ;;  %v2188_v60 = vpop.f32.mrb[2].mxu0  ;;  %3357 = vmatpush1.bf16.msra.mxu0 %v3926_v43  ;;  %v2230_v63 = vadd.f32 %v2229_v58, %v556_v44  ;;  %v2231_v2 = vpop.f32.mrb[2].mxu1  ;;  %3400 = vmatpush1.bf16.msra.mxu1 %v3928_v45  ;;  %v572_v43 = vrot.slane %v4928_v29, %v4992_v32  ;;  %v492_v53 = vld [vmem:[%s4597_s9 + $0x6f8] sm:$0xff] }
 0x163   : > { %3526 = vst [vmem:[%s4964_s8] sm:$0xff] %v2185_v51  ;;  %v2189_v1 = vadd.f32 %v2188_v60, %v544_v37  ;;  %v2190_v3 = vpop.f32.mrb[3].mxu0  ;;  %3358 = vmatprep.subr.bf16.mxu0 %v3991_v46  ;;  %3528 = vst [vmem:[%s4964_s8 + $0x10] sm:$0xff] %v2228_v56  ;;  %v2232_v5 = vadd.f32 %v2231_v2, %v552_v40  ;;  %v2233_v7 = vpop.f32.mrb[3].mxu1  ;;  %3401 = vmatprep.subr.bf16.mxu1 %v3993_v48  ;;  %v491_v48 = vld [vmem:[%s4597_s9 + $0x6f0] sm:$0xff] }
 0x164   : > { %3527 = vst [vmem:[%s4964_s8 + $0x8] sm:$0xff] %v2187_v57  ;;  %v2191_v6 = vadd.f32 %v2190_v3, %v548_v42  ;;  %3529 = vst [vmem:[%s4964_s8 + $0x18] sm:$0xff] %v2230_v63  ;;  %v2234_v11 = vadd.f32 %v2233_v7, %v556_v44  ;;  %v560_v37 = vrot.slane %v4928_v29, %v4981_v21 }
 0x165   : > { %3590 = vst [vmem:[%s4964_s8 + $0x200] sm:$0xff] %v2189_v1  ;;  %3592 = vst [vmem:[%s4964_s8 + $0x210] sm:$0xff] %v2232_v5  ;;  %v564_v40 = vrot.slane %v4928_v29, %v4989_v27  ;;  %v3930_v42 = vcombine.low %v363_v19, %v395_v20  ;;  %v3932_v44 = vcombine.low %v364_v22, %v396_v23 }
 0x166   : > { %3591 = vst [vmem:[%s4964_s8 + $0x208] sm:$0xff] %v2191_v6  ;;  %3359 = vmatpush1.bf16.msra.mxu0 %v3990_v61  ;;  %3593 = vst [vmem:[%s4964_s8 + $0x218] sm:$0xff] %v2234_v11  ;;  %3402 = vmatpush1.bf16.msra.mxu1 %v3992_v62  ;;  %v3995_v45 = vcombine.high %v427_v36, %v459_v41  ;;  %v3994_v58 = vcombine.low %v427_v36, %v459_v41 }
 0x167   : > { %3360 = vmatprep.subr.bf16.mxu0 %v4055_v4  ;;  %3403 = vmatprep.subr.bf16.mxu1 %v4057_v8  ;;  %v3996_v60 = vcombine.low %v428_v38, %v460_v39  ;;  %v4061_v5 = vcombine.high %v492_v53, %v524_v54  ;;  %v4058_v7 = vcombine.low %v491_v48, %v523_v49 }
 0x168   : > { %v4060_v8 = vcombine.low %v492_v53, %v524_v54  ;;  %v584_v11 = vrot.slane %v526_v9, %v4931_v30  ;;  %v592_v38 = vrot.slane %v526_v9, %v4981_v21  ;;  %v600_v39 = vrot.slane %v526_v9, %v4986_v26 }
 0x16a   : > { %3361 = vmatpush1.bf16.msra.mxu0 %v4054_v14  ;;  %3404 = vmatpush1.bf16.msra.mxu1 %v4056_v15 }
 0x16b   : > { %3440 = vmatprep.subr.bf16.mxu0 %v3867_v16  ;;  %3483 = vmatprep.subr.bf16.mxu1 %v3869_v17 }
 0x16d   : > { %4090 = vmatmul.mubr.msk.bf16.vlgmr.msra.gmra.mrb[56].mxu0 %vm2146_vm0, %v4853_v59  ;;  %4091 = vmatmul.mubr.msk.bf16.vlgmr.msra.gmra.mrb[56].mxu1 %vm2146_vm0, %v4853_v59 }
 0x16e   : > { %3441 = vmatpush1.bf16.msra.mxu0 %v3866_v24  ;;  %3484 = vmatpush1.bf16.msra.mxu1 %v3868_v28 }
 0x16f   : > { %3442 = vmatprep.subr.bf16.mxu0 %v3931_v34  ;;  %3485 = vmatprep.subr.bf16.mxu1 %v3933_v35 }
 0x170   : > { %v2270_v46 = vpop.f32.mrb[4].mxu0  ;;  %3472 = vmatprep.mubr.bf16.mxu0 %v4375_v0  ;;  %v2313_v51 = vpop.f32.mrb[4].mxu1  ;;  %3515 = vmatprep.mubr.bf16.mxu1 %v4375_v0  ;;  %v4059_v0 = vcombine.high %v491_v48, %v523_v49 }
 0x171   : > { %v2271_v50 = vadd.f32 %v2270_v46, %v560_v37  ;;  %v2272_v52 = vpop.f32.mrb[5].mxu0  ;;  %v2314_v29 = vadd.f32 %v2313_v51, %v568_v18  ;;  %v2315_v56 = vpop.f32.mrb[5].mxu1 }
 0x172   : > { %v2273_v55 = vadd.f32 %v2272_v52, %v564_v40  ;;  %v2274_v57 = vpop.f32.mrb[6].mxu0  ;;  %3443 = vmatpush1.bf16.msra.mxu0 %v3930_v42  ;;  %v2316_v61 = vadd.f32 %v2315_v56, %v572_v43  ;;  %v2317_v63 = vpop.f32.mrb[6].mxu1  ;;  %3486 = vmatpush1.bf16.msra.mxu1 %v3932_v44 }
 0x173   : > { %3530 = vst [vmem:[%s4964_s8 + $0x20] sm:$0xff] %v2271_v50  ;;  %v2275_v62 = vadd.f32 %v2274_v57, %v560_v37  ;;  %v2276_v1 = vpop.f32.mrb[7].mxu0  ;;  %3444 = vmatprep.subr.bf16.mxu0 %v3995_v45  ;;  %3532 = vst [vmem:[%s4964_s8 + $0x30] sm:$0xff] %v2314_v29  ;;  %v2318_v2 = vadd.f32 %v2317_v63, %v568_v18  ;;  %v2319_v4 = vpop.f32.mrb[7].mxu1  ;;  %3487 = vmatprep.subr.bf16.mxu1 %v3997_v47  ;;  %v527_v57 = vld [vmem:[%s4925_s30 + $0x10] sm:$0xff] }
 0x174   : > { %3531 = vst [vmem:[%s4964_s8 + $0x28] sm:$0xff] %v2273_v55  ;;  %v2277_v3 = vadd.f32 %v2276_v1, %v564_v40  ;;  %3533 = vst [vmem:[%s4964_s8 + $0x38] sm:$0xff] %v2316_v61  ;;  %v2320_v6 = vadd.f32 %v2319_v4, %v572_v43  ;;  %v596_v18 = vrot.slane %v526_v9, %v4989_v27 }
 0x175   : > { %3594 = vst [vmem:[%s4964_s8 + $0x220] sm:$0xff] %v2275_v62  ;;  %3596 = vst [vmem:[%s4964_s8 + $0x230] sm:$0xff] %v2318_v2  ;;  %v604_v40 = vrot.slane %v526_v9, %v4992_v32  ;;  %v612_v61 = vrot.slane %v527_v57, %v4934_v31  ;;  %v620_v62 = vrot.slane %v527_v57, %v4937_v33 }
 0x176   : > { %3595 = vst [vmem:[%s4964_s8 + $0x228] sm:$0xff] %v2277_v3  ;;  %3445 = vmatpush1.bf16.msra.mxu0 %v3994_v58  ;;  %3597 = vst [vmem:[%s4964_s8 + $0x238] sm:$0xff] %v2320_v6  ;;  %3488 = vmatpush1.bf16.msra.mxu1 %v3996_v60  ;;  %v608_v58 = vrot.slane %v527_v57, %v4921_v25  ;;  %v616_v60 = vrot.slane %v527_v57, %v4931_v30 }
 0x177   : > { %3446 = vmatprep.subr.bf16.mxu0 %v4059_v0  ;;  %3489 = vmatprep.subr.bf16.mxu1 %v4061_v5 }
 0x17a   : > { %3447 = vmatpush1.bf16.msra.mxu0 %v4058_v7  ;;  %3490 = vmatpush1.bf16.msra.mxu1 %v4060_v8 }
 0x17d   : > { %4092 = vmatmul.mubr.msk.bf16.vlgmr.msra.gmra.mrb[60].mxu0 %vm2146_vm0, %v4853_v59  ;;  %4093 = vmatmul.mubr.msk.bf16.vlgmr.msra.gmra.mrb[60].mxu1 %vm2146_vm0, %v4853_v59 }
 0x180   : > { %v2356_v14 = vpop.f32.mrb[8].mxu0  ;;  %v2399_v16 = vpop.f32.mrb[8].mxu1 }
 0x181   : > { %v2357_v15 = vadd.f32 %v2356_v14, %v576_v10  ;;  %v2358_v17 = vpop.f32.mrb[9].mxu0  ;;  %v2400_v19 = vadd.f32 %v2399_v16, %v584_v11  ;;  %v2401_v22 = vpop.f32.mrb[9].mxu1  ;;  %v632_v16 = vrot.slane %v527_v57, %v4986_v26 }
 0x182   : > { %v2359_v20 = vadd.f32 %v2358_v17, %v580_v12  ;;  %v2360_v59 = vpop.f32.mrb[10].mxu0  ;;  %v2402_v23 = vadd.f32 %v2401_v22, %v588_v13  ;;  %v2403_v28 = vpop.f32.mrb[10].mxu1  ;;  %v628_v17 = vrot.slane %v527_v57, %v4989_v27 }
 0x183   : > { %3534 = vst [vmem:[%s4964_s8 + $0x40] sm:$0xff] %v2357_v15  ;;  %v2361_v24 = vadd.f32 %v2360_v59, %v576_v10  ;;  %v2362_v34 = vpop.f32.mrb[11].mxu0  ;;  %3536 = vst [vmem:[%s4964_s8 + $0x50] sm:$0xff] %v2400_v19  ;;  %v2404_v35 = vadd.f32 %v2403_v28, %v584_v11  ;;  %v2405_v41 = vpop.f32.mrb[11].mxu1  ;;  %v624_v15 = vrot.slane %v527_v57, %v4981_v21 }
 0x184   : > { %3535 = vst [vmem:[%s4964_s8 + $0x48] sm:$0xff] %v2359_v20  ;;  %v2363_v36 = vadd.f32 %v2362_v34, %v580_v12  ;;  %3537 = vst [vmem:[%s4964_s8 + $0x58] sm:$0xff] %v2402_v23  ;;  %v2406_v37 = vadd.f32 %v2405_v41, %v588_v13  ;;  %v636_v19 = vrot.slane %v527_v57, %v4992_v32 }
 0x185   : > { %3598 = vst [vmem:[%s4964_s8 + $0x240] sm:$0xff] %v2361_v24  ;;  %3600 = vst [vmem:[%s4964_s8 + $0x250] sm:$0xff] %v2404_v35 }
 0x186   : > { %3599 = vst [vmem:[%s4964_s8 + $0x248] sm:$0xff] %v2363_v36  ;;  %3601 = vst [vmem:[%s4964_s8 + $0x258] sm:$0xff] %v2406_v37 }
 0x190   : > { %v2442_v42 = vpop.f32.mrb[12].mxu0  ;;  %v2485_v44 = vpop.f32.mrb[12].mxu1 }
 0x191   : > { %v2443_v43 = vadd.f32 %v2442_v42, %v592_v38  ;;  %v2444_v45 = vpop.f32.mrb[13].mxu0  ;;  %v2486_v46 = vadd.f32 %v2485_v44, %v600_v39  ;;  %v2487_v48 = vpop.f32.mrb[13].mxu1 }
 0x192   : > { %v2445_v47 = vadd.f32 %v2444_v45, %v596_v18  ;;  %v2446_v49 = vpop.f32.mrb[14].mxu0  ;;  %v2488_v50 = vadd.f32 %v2487_v48, %v604_v40  ;;  %v2489_v52 = vpop.f32.mrb[14].mxu1 }
 0x193   : > { %3538 = vst [vmem:[%s4964_s8 + $0x60] sm:$0xff] %v2443_v43  ;;  %v2447_v51 = vadd.f32 %v2446_v49, %v592_v38  ;;  %v2448_v53 = vpop.f32.mrb[15].mxu0  ;;  %3540 = vst [vmem:[%s4964_s8 + $0x70] sm:$0xff] %v2486_v46  ;;  %v2490_v54 = vadd.f32 %v2489_v52, %v600_v39  ;;  %v2491_v55 = vpop.f32.mrb[15].mxu1  ;;  %v528_v43 = vld [vmem:[%s4925_s30 + $0x18] sm:$0xff] }
 0x194   : > { %3539 = vst [vmem:[%s4964_s8 + $0x68] sm:$0xff] %v2445_v47  ;;  %v2449_v29 = vadd.f32 %v2448_v53, %v596_v18  ;;  %3541 = vst [vmem:[%s4964_s8 + $0x78] sm:$0xff] %v2488_v50  ;;  %v2492_v56 = vadd.f32 %v2491_v55, %v604_v40  ;;  %v640_v44 = vrot.slane %v528_v43, %v4921_v25 }
 0x195   : > { %3602 = vst [vmem:[%s4964_s8 + $0x260] sm:$0xff] %v2447_v51  ;;  %3604 = vst [vmem:[%s4964_s8 + $0x270] sm:$0xff] %v2490_v54  ;;  %v648_v45 = vrot.slane %v528_v43, %v4931_v30  ;;  %v644_v46 = vrot.slane %v528_v43, %v4934_v31  ;;  %v652_v47 = vrot.slane %v528_v43, %v4937_v33 }
 0x196   : > { %3603 = vst [vmem:[%s4964_s8 + $0x268] sm:$0xff] %v2449_v29  ;;  %3605 = vst [vmem:[%s4964_s8 + $0x278] sm:$0xff] %v2492_v56 }
 0x1a0   : > { %v2528_v63 = vpop.f32.mrb[16].mxu0  ;;  %v2571_v0 = vpop.f32.mrb[16].mxu1 }
 0x1a1   : > { %v2529_v1 = vadd.f32 %v2528_v63, %v608_v58  ;;  %v2530_v2 = vpop.f32.mrb[17].mxu0  ;;  %v2572_v3 = vadd.f32 %v2571_v0, %v616_v60  ;;  %v2573_v5 = vpop.f32.mrb[17].mxu1  ;;  %v664_v0 = vrot.slane %v528_v43, %v4986_v26 }
 0x1a2   : > { %v2531_v4 = vadd.f32 %v2530_v2, %v612_v61  ;;  %v2532_v6 = vpop.f32.mrb[18].mxu0  ;;  %v2574_v7 = vadd.f32 %v2573_v5, %v620_v62  ;;  %v2575_v9 = vpop.f32.mrb[18].mxu1  ;;  %v660_v2 = vrot.slane %v528_v43, %v4989_v27 }
 0x1a3   : > { %3542 = vst [vmem:[%s4964_s8 + $0x80] sm:$0xff] %v2529_v1  ;;  %v2533_v8 = vadd.f32 %v2532_v6, %v608_v58  ;;  %v2534_v10 = vpop.f32.mrb[19].mxu0  ;;  %3544 = vst [vmem:[%s4964_s8 + $0x90] sm:$0xff] %v2572_v3  ;;  %v2576_v11 = vadd.f32 %v2575_v9, %v616_v60  ;;  %v2577_v13 = vpop.f32.mrb[19].mxu1  ;;  %v656_v1 = vrot.slane %v528_v43, %v4981_v21 }
 0x1a4   : > { %3543 = vst [vmem:[%s4964_s8 + $0x88] sm:$0xff] %v2531_v4  ;;  %v2535_v12 = vadd.f32 %v2534_v10, %v612_v61  ;;  %3545 = vst [vmem:[%s4964_s8 + $0x98] sm:$0xff] %v2574_v7  ;;  %v2578_v14 = vadd.f32 %v2577_v13, %v620_v62  ;;  %v668_v3 = vrot.slane %v528_v43, %v4992_v32 }
 0x1a5   : > { %3606 = vst [vmem:[%s4964_s8 + $0x280] sm:$0xff] %v2533_v8  ;;  %3608 = vst [vmem:[%s4964_s8 + $0x290] sm:$0xff] %v2576_v11 }
 0x1a6   : > { %3607 = vst [vmem:[%s4964_s8 + $0x288] sm:$0xff] %v2535_v12  ;;  %3609 = vst [vmem:[%s4964_s8 + $0x298] sm:$0xff] %v2578_v14 }
 0x1b0   : > { %v2614_v20 = vpop.f32.mrb[20].mxu0  ;;  %v2657_v59 = vpop.f32.mrb[20].mxu1 }
 0x1b1   : > { %v2615_v22 = vadd.f32 %v2614_v20, %v624_v15  ;;  %v2616_v23 = vpop.f32.mrb[21].mxu0  ;;  %v2658_v24 = vadd.f32 %v2657_v59, %v632_v16  ;;  %v2659_v34 = vpop.f32.mrb[21].mxu1 }
 0x1b2   : > { %v2617_v28 = vadd.f32 %v2616_v23, %v628_v17  ;;  %v2618_v35 = vpop.f32.mrb[22].mxu0  ;;  %v2660_v36 = vadd.f32 %v2659_v34, %v636_v19  ;;  %v2661_v37 = vpop.f32.mrb[22].mxu1 }
 0x1b3   : > { %3546 = vst [vmem:[%s4964_s8 + $0xa0] sm:$0xff] %v2615_v22  ;;  %v2619_v41 = vadd.f32 %v2618_v35, %v624_v15  ;;  %v2620_v38 = vpop.f32.mrb[23].mxu0  ;;  %3548 = vst [vmem:[%s4964_s8 + $0xb0] sm:$0xff] %v2658_v24  ;;  %v2662_v39 = vadd.f32 %v2661_v37, %v632_v16  ;;  %v2663_v40 = vpop.f32.mrb[23].mxu1  ;;  %v529_v22 = vld [vmem:[%s4925_s30 + $0x20] sm:$0xff] }
 0x1b4   : > { %3547 = vst [vmem:[%s4964_s8 + $0xa8] sm:$0xff] %v2617_v28  ;;  %v2621_v18 = vadd.f32 %v2620_v38, %v628_v17  ;;  %3549 = vst [vmem:[%s4964_s8 + $0xb8] sm:$0xff] %v2660_v36  ;;  %v2664_v42 = vadd.f32 %v2663_v40, %v636_v19  ;;  %v672_v59 = vrot.slane %v529_v22, %v4921_v25 }
 0x1b5   : > { %3610 = vst [vmem:[%s4964_s8 + $0x2a0] sm:$0xff] %v2619_v41  ;;  %3612 = vst [vmem:[%s4964_s8 + $0x2b0] sm:$0xff] %v2662_v39  ;;  %v680_v23 = vrot.slane %v529_v22, %v4931_v30  ;;  %v676_v24 = vrot.slane %v529_v22, %v4934_v31  ;;  %v684_v28 = vrot.slane %v529_v22, %v4937_v33 }
 0x1b6   : > { %3611 = vst [vmem:[%s4964_s8 + $0x2a8] sm:$0xff] %v2621_v18  ;;  %3613 = vst [vmem:[%s4964_s8 + $0x2b8] sm:$0xff] %v2664_v42 }
 0x1c0   : > { %v2700_v48 = vpop.f32.mrb[24].mxu0  ;;  %v2743_v50 = vpop.f32.mrb[24].mxu1 }
 0x1c1   : > { %v2701_v49 = vadd.f32 %v2700_v48, %v640_v44  ;;  %v2702_v51 = vpop.f32.mrb[25].mxu0  ;;  %v2744_v52 = vadd.f32 %v2743_v50, %v648_v45  ;;  %v2745_v54 = vpop.f32.mrb[25].mxu1  ;;  %v696_v50 = vrot.slane %v529_v22, %v4986_v26 }
 0x1c2   : > { %v2703_v53 = vadd.f32 %v2702_v51, %v644_v46  ;;  %v2704_v29 = vpop.f32.mrb[26].mxu0  ;;  %v2746_v55 = vadd.f32 %v2745_v54, %v652_v47  ;;  %v2747_v57 = vpop.f32.mrb[26].mxu1  ;;  %v692_v51 = vrot.slane %v529_v22, %v4989_v27 }
 0x1c3   : > { %3550 = vst [vmem:[%s4964_s8 + $0xc0] sm:$0xff] %v2701_v49  ;;  %v2705_v56 = vadd.f32 %v2704_v29, %v640_v44  ;;  %v2706_v58 = vpop.f32.mrb[27].mxu0  ;;  %3552 = vst [vmem:[%s4964_s8 + $0xd0] sm:$0xff] %v2744_v52  ;;  %v2748_v60 = vadd.f32 %v2747_v57, %v648_v45  ;;  %v2749_v62 = vpop.f32.mrb[27].mxu1  ;;  %v688_v49 = vrot.slane %v529_v22, %v4981_v21 }
 0x1c4   : > { %3551 = vst [vmem:[%s4964_s8 + $0xc8] sm:$0xff] %v2703_v53  ;;  %v2707_v61 = vadd.f32 %v2706_v58, %v644_v46  ;;  %3553 = vst [vmem:[%s4964_s8 + $0xd8] sm:$0xff] %v2746_v55  ;;  %v2750_v63 = vadd.f32 %v2749_v62, %v652_v47  ;;  %v700_v52 = vrot.slane %v529_v22, %v4992_v32 }
 0x1c5   : > { %3614 = vst [vmem:[%s4964_s8 + $0x2c0] sm:$0xff] %v2705_v56  ;;  %3616 = vst [vmem:[%s4964_s8 + $0x2d0] sm:$0xff] %v2748_v60 }
 0x1c6   : > { %3615 = vst [vmem:[%s4964_s8 + $0x2c8] sm:$0xff] %v2707_v61  ;;  %3617 = vst [vmem:[%s4964_s8 + $0x2d8] sm:$0xff] %v2750_v63 }
 0x1d0   : > { %v2786_v4 = vpop.f32.mrb[28].mxu0  ;;  %v2829_v6 = vpop.f32.mrb[28].mxu1 }
 0x1d1   : > { %v2787_v5 = vadd.f32 %v2786_v4, %v656_v1  ;;  %v2788_v7 = vpop.f32.mrb[29].mxu0  ;;  %v2830_v8 = vadd.f32 %v2829_v6, %v664_v0  ;;  %v2831_v10 = vpop.f32.mrb[29].mxu1 }
 0x1d2   : > { %v2789_v9 = vadd.f32 %v2788_v7, %v660_v2  ;;  %v2790_v11 = vpop.f32.mrb[30].mxu0  ;;  %v2832_v12 = vadd.f32 %v2831_v10, %v668_v3  ;;  %v2833_v14 = vpop.f32.mrb[30].mxu1 }
 0x1d3   : > { %3554 = vst [vmem:[%s4964_s8 + $0xe0] sm:$0xff] %v2787_v5  ;;  %v2791_v13 = vadd.f32 %v2790_v11, %v656_v1  ;;  %v2792_v15 = vpop.f32.mrb[31].mxu0  ;;  %3556 = vst [vmem:[%s4964_s8 + $0xf0] sm:$0xff] %v2830_v8  ;;  %v2834_v16 = vadd.f32 %v2833_v14, %v664_v0  ;;  %v2835_v19 = vpop.f32.mrb[31].mxu1  ;;  %v530_v5 = vld [vmem:[%s4925_s30 + $0x28] sm:$0xff] }
 0x1d4   : > { %3555 = vst [vmem:[%s4964_s8 + $0xe8] sm:$0xff] %v2789_v9  ;;  %v2793_v17 = vadd.f32 %v2792_v15, %v660_v2  ;;  %3557 = vst [vmem:[%s4964_s8 + $0xf8] sm:$0xff] %v2832_v12  ;;  %v2836_v20 = vadd.f32 %v2835_v19, %v668_v3  ;;  %v704_v6 = vrot.slane %v530_v5, %v4921_v25 }
 0x1d5   : > { %3618 = vst [vmem:[%s4964_s8 + $0x2e0] sm:$0xff] %v2791_v13  ;;  %3620 = vst [vmem:[%s4964_s8 + $0x2f0] sm:$0xff] %v2834_v16  ;;  %v712_v7 = vrot.slane %v530_v5, %v4931_v30  ;;  %v708_v8 = vrot.slane %v530_v5, %v4934_v31  ;;  %v716_v9 = vrot.slane %v530_v5, %v4937_v33 }
 0x1d6   : > { %3619 = vst [vmem:[%s4964_s8 + $0x2e8] sm:$0xff] %v2793_v17  ;;  %3621 = vst [vmem:[%s4964_s8 + $0x2f8] sm:$0xff] %v2836_v20 }
 0x1e0   : > { %v2872_v34 = vpop.f32.mrb[32].mxu0  ;;  %v2915_v36 = vpop.f32.mrb[32].mxu1 }
 0x1e1   : > { %v2873_v35 = vadd.f32 %v2872_v34, %v672_v59  ;;  %v2874_v41 = vpop.f32.mrb[33].mxu0  ;;  %v2916_v37 = vadd.f32 %v2915_v36, %v680_v23  ;;  %v2917_v39 = vpop.f32.mrb[33].mxu1  ;;  %v728_v36 = vrot.slane %v530_v5, %v4986_v26 }
 0x1e2   : > { %v2875_v38 = vadd.f32 %v2874_v41, %v676_v24  ;;  %v2876_v18 = vpop.f32.mrb[34].mxu0  ;;  %v2918_v40 = vadd.f32 %v2917_v39, %v684_v28  ;;  %v2919_v43 = vpop.f32.mrb[34].mxu1  ;;  %v724_v41 = vrot.slane %v530_v5, %v4989_v27 }
 0x1e3   : > { %3558 = vst [vmem:[%s4964_s8 + $0x100] sm:$0xff] %v2873_v35  ;;  %v2877_v42 = vadd.f32 %v2876_v18, %v672_v59  ;;  %v2878_v44 = vpop.f32.mrb[35].mxu0  ;;  %3560 = vst [vmem:[%s4964_s8 + $0x110] sm:$0xff] %v2916_v37  ;;  %v2920_v45 = vadd.f32 %v2919_v43, %v680_v23  ;;  %v2921_v47 = vpop.f32.mrb[35].mxu1  ;;  %v720_v35 = vrot.slane %v530_v5, %v4981_v21 }
 0x1e4   : > { %3559 = vst [vmem:[%s4964_s8 + $0x108] sm:$0xff] %v2875_v38  ;;  %v2879_v46 = vadd.f32 %v2878_v44, %v676_v24  ;;  %3561 = vst [vmem:[%s4964_s8 + $0x118] sm:$0xff] %v2918_v40  ;;  %v2922_v48 = vadd.f32 %v2921_v47, %v684_v28  ;;  %v732_v37 = vrot.slane %v530_v5, %v4992_v32 }
 0x1e5   : > { %3622 = vst [vmem:[%s4964_s8 + $0x300] sm:$0xff] %v2877_v42  ;;  %3624 = vst [vmem:[%s4964_s8 + $0x310] sm:$0xff] %v2920_v45 }
 0x1e6   : > { %3623 = vst [vmem:[%s4964_s8 + $0x308] sm:$0xff] %v2879_v46  ;;  %3625 = vst [vmem:[%s4964_s8 + $0x318] sm:$0xff] %v2922_v48 }
 0x1f0   : > { %v2958_v53 = vpop.f32.mrb[36].mxu0  ;;  %v3001_v29 = vpop.f32.mrb[36].mxu1 }
 0x1f1   : > { %v2959_v54 = vadd.f32 %v2958_v53, %v688_v49  ;;  %v2960_v55 = vpop.f32.mrb[37].mxu0  ;;  %v3002_v56 = vadd.f32 %v3001_v29, %v696_v50  ;;  %v3003_v58 = vpop.f32.mrb[37].mxu1 }
 0x1f2   : > { %v2961_v57 = vadd.f32 %v2960_v55, %v692_v51  ;;  %v2962_v60 = vpop.f32.mrb[38].mxu0  ;;  %v3004_v61 = vadd.f32 %v3003_v58, %v700_v52  ;;  %v3005_v63 = vpop.f32.mrb[38].mxu1 }
 0x1f3   : > { %3562 = vst [vmem:[%s4964_s8 + $0x120] sm:$0xff] %v2959_v54  ;;  %v2963_v62 = vadd.f32 %v2962_v60, %v688_v49  ;;  %v2964_v1 = vpop.f32.mrb[39].mxu0  ;;  %3564 = vst [vmem:[%s4964_s8 + $0x130] sm:$0xff] %v3002_v56  ;;  %v3006_v0 = vadd.f32 %v3005_v63, %v696_v50  ;;  %v3007_v3 = vpop.f32.mrb[39].mxu1  ;;  %v531_v54 = vld [vmem:[%s4925_s30 + $0x30] sm:$0xff] }
 0x1f4   : > { %3563 = vst [vmem:[%s4964_s8 + $0x128] sm:$0xff] %v2961_v57  ;;  %v2965_v2 = vadd.f32 %v2964_v1, %v692_v51  ;;  %3565 = vst [vmem:[%s4964_s8 + $0x138] sm:$0xff] %v3004_v61  ;;  %v3008_v4 = vadd.f32 %v3007_v3, %v700_v52  ;;  %v736_v29 = vrot.slane %v531_v54, %v4921_v25 }
 0x1f5   : > { %3626 = vst [vmem:[%s4964_s8 + $0x320] sm:$0xff] %v2963_v62  ;;  %3628 = vst [vmem:[%s4964_s8 + $0x330] sm:$0xff] %v3006_v0  ;;  %v744_v55 = vrot.slane %v531_v54, %v4931_v30  ;;  %v740_v56 = vrot.slane %v531_v54, %v4934_v31  ;;  %v748_v57 = vrot.slane %v531_v54, %v4937_v33 }
 0x1f6   : > { %3627 = vst [vmem:[%s4964_s8 + $0x328] sm:$0xff] %v2965_v2  ;;  %3629 = vst [vmem:[%s4964_s8 + $0x338] sm:$0xff] %v3008_v4 }
 0x200   : > { %v3044_v10 = vpop.f32.mrb[40].mxu0  ;;  %v3087_v12 = vpop.f32.mrb[40].mxu1 }
 0x201   : > { %v3045_v11 = vadd.f32 %v3044_v10, %v704_v6  ;;  %v3046_v13 = vpop.f32.mrb[41].mxu0  ;;  %v3088_v14 = vadd.f32 %v3087_v12, %v712_v7  ;;  %v3089_v16 = vpop.f32.mrb[41].mxu1  ;;  %v760_v12 = vrot.slane %v531_v54, %v4986_v26 }
 0x202   : > { %v3047_v15 = vadd.f32 %v3046_v13, %v708_v8  ;;  %v3048_v17 = vpop.f32.mrb[42].mxu0  ;;  %v3090_v19 = vadd.f32 %v3089_v16, %v716_v9  ;;  %v3091_v22 = vpop.f32.mrb[42].mxu1  ;;  %v756_v13 = vrot.slane %v531_v54, %v4989_v27 }
 0x203   : > { %3566 = vst [vmem:[%s4964_s8 + $0x140] sm:$0xff] %v3045_v11  ;;  %v3049_v20 = vadd.f32 %v3048_v17, %v704_v6  ;;  %v3050_v59 = vpop.f32.mrb[43].mxu0  ;;  %3568 = vst [vmem:[%s4964_s8 + $0x150] sm:$0xff] %v3088_v14  ;;  %v3092_v23 = vadd.f32 %v3091_v22, %v712_v7  ;;  %v3093_v28 = vpop.f32.mrb[43].mxu1  ;;  %v752_v11 = vrot.slane %v531_v54, %v4981_v21 }
 0x204   : > { %3567 = vst [vmem:[%s4964_s8 + $0x148] sm:$0xff] %v3047_v15  ;;  %v3051_v24 = vadd.f32 %v3050_v59, %v708_v8  ;;  %3569 = vst [vmem:[%s4964_s8 + $0x158] sm:$0xff] %v3090_v19  ;;  %v3094_v34 = vadd.f32 %v3093_v28, %v716_v9  ;;  %v764_v14 = vrot.slane %v531_v54, %v4992_v32 }
 0x205   : > { %3630 = vst [vmem:[%s4964_s8 + $0x340] sm:$0xff] %v3049_v20  ;;  %3632 = vst [vmem:[%s4964_s8 + $0x350] sm:$0xff] %v3092_v23 }
 0x206   : > { %3631 = vst [vmem:[%s4964_s8 + $0x348] sm:$0xff] %v3051_v24  ;;  %3633 = vst [vmem:[%s4964_s8 + $0x358] sm:$0xff] %v3094_v34 }
 0x210   : > { %v3130_v38 = vpop.f32.mrb[44].mxu0  ;;  %v3173_v18 = vpop.f32.mrb[44].mxu1 }
 0x211   : > { %v3131_v39 = vadd.f32 %v3130_v38, %v720_v35  ;;  %v3132_v40 = vpop.f32.mrb[45].mxu0  ;;  %v3174_v42 = vadd.f32 %v3173_v18, %v728_v36  ;;  %v3175_v44 = vpop.f32.mrb[45].mxu1 }
 0x212   : > { %v3133_v43 = vadd.f32 %v3132_v40, %v724_v41  ;;  %v3134_v45 = vpop.f32.mrb[46].mxu0  ;;  %v3176_v46 = vadd.f32 %v3175_v44, %v732_v37  ;;  %v3177_v48 = vpop.f32.mrb[46].mxu1 }
 0x213   : > { %3570 = vst [vmem:[%s4964_s8 + $0x160] sm:$0xff] %v3131_v39  ;;  %v3135_v47 = vadd.f32 %v3134_v45, %v720_v35  ;;  %v3136_v49 = vpop.f32.mrb[47].mxu0  ;;  %3572 = vst [vmem:[%s4964_s8 + $0x170] sm:$0xff] %v3174_v42  ;;  %v3178_v50 = vadd.f32 %v3177_v48, %v728_v36  ;;  %v3179_v52 = vpop.f32.mrb[47].mxu1  ;;  %v532_v39 = vld [vmem:[%s4925_s30 + $0x38] sm:$0xff] }
 0x214   : > { %3571 = vst [vmem:[%s4964_s8 + $0x168] sm:$0xff] %v3133_v43  ;;  %v3137_v51 = vadd.f32 %v3136_v49, %v724_v41  ;;  %3573 = vst [vmem:[%s4964_s8 + $0x178] sm:$0xff] %v3176_v46  ;;  %v3180_v53 = vadd.f32 %v3179_v52, %v732_v37  ;;  %v768_v18 = vrot.slane %v532_v39, %v4921_v25 }
 0x215   : > { %3634 = vst [vmem:[%s4964_s8 + $0x360] sm:$0xff] %v3135_v47  ;;  %3636 = vst [vmem:[%s4964_s8 + $0x370] sm:$0xff] %v3178_v50  ;;  %v776_v40 = vrot.slane %v532_v39, %v4931_v30  ;;  %v772_v42 = vrot.slane %v532_v39, %v4934_v31  ;;  %v780_v43 = vrot.slane %v532_v39, %v4937_v33 }
 0x216   : > { %3635 = vst [vmem:[%s4964_s8 + $0x368] sm:$0xff] %v3137_v51  ;;  %3637 = vst [vmem:[%s4964_s8 + $0x378] sm:$0xff] %v3180_v53 }
 0x220   : > { %v3216_v58 = vpop.f32.mrb[48].mxu0  ;;  %v3259_v61 = vpop.f32.mrb[48].mxu1 }
 0x221   : > { %v3217_v60 = vadd.f32 %v3216_v58, %v736_v29  ;;  %v3218_v62 = vpop.f32.mrb[49].mxu0  ;;  %v3260_v63 = vadd.f32 %v3259_v61, %v744_v55  ;;  %v3261_v0 = vpop.f32.mrb[49].mxu1  ;;  %v796_v58 = vrot.slane %v532_v39, %v4992_v32 }
 0x222   : > { %v3219_v1 = vadd.f32 %v3218_v62, %v740_v56  ;;  %v3220_v2 = vpop.f32.mrb[50].mxu0  ;;  %v3262_v3 = vadd.f32 %v3261_v0, %v748_v57  ;;  %v3263_v5 = vpop.f32.mrb[50].mxu1 }
 0x223   : > { %3574 = vst [vmem:[%s4964_s8 + $0x180] sm:$0xff] %v3217_v60  ;;  %v3221_v4 = vadd.f32 %v3220_v2, %v736_v29  ;;  %v3222_v6 = vpop.f32.mrb[51].mxu0  ;;  %3576 = vst [vmem:[%s4964_s8 + $0x190] sm:$0xff] %v3260_v63  ;;  %v3264_v7 = vadd.f32 %v3263_v5, %v744_v55  ;;  %v3265_v9 = vpop.f32.mrb[51].mxu1  ;;  %v784_v55 = vrot.slane %v532_v39, %v4981_v21 }
 0x224   : > { %3575 = vst [vmem:[%s4964_s8 + $0x188] sm:$0xff] %v3219_v1  ;;  %v3223_v8 = vadd.f32 %v3222_v6, %v740_v56  ;;  %3577 = vst [vmem:[%s4964_s8 + $0x198] sm:$0xff] %v3262_v3  ;;  %v3266_v10 = vadd.f32 %v3265_v9, %v748_v57  ;;  %v792_v56 = vrot.slane %v532_v39, %v4986_v26 }
 0x225   : > { %3638 = vst [vmem:[%s4964_s8 + $0x380] sm:$0xff] %v3221_v4  ;;  %3640 = vst [vmem:[%s4964_s8 + $0x390] sm:$0xff] %v3264_v7  ;;  %v788_v57 = vrot.slane %v532_v39, %v4989_v27 }
 0x226   : > { %3639 = vst [vmem:[%s4964_s8 + $0x388] sm:$0xff] %v3223_v8  ;;  %3641 = vst [vmem:[%s4964_s8 + $0x398] sm:$0xff] %v3266_v10 }
 0x230   : > { %v3302_v15 = vpop.f32.mrb[52].mxu0  ;;  %v3345_v17 = vpop.f32.mrb[52].mxu1 }
 0x231   : > { %v3303_v16 = vadd.f32 %v3302_v15, %v752_v11  ;;  %v3304_v19 = vpop.f32.mrb[53].mxu0  ;;  %v3346_v20 = vadd.f32 %v3345_v17, %v760_v12  ;;  %v3347_v59 = vpop.f32.mrb[53].mxu1 }
 0x232   : > { %v3305_v22 = vadd.f32 %v3304_v19, %v756_v13  ;;  %v3306_v23 = vpop.f32.mrb[54].mxu0  ;;  %v3348_v24 = vadd.f32 %v3347_v59, %v764_v14  ;;  %v3349_v34 = vpop.f32.mrb[54].mxu1 }
 0x233   : > { %3578 = vst [vmem:[%s4964_s8 + $0x1a0] sm:$0xff] %v3303_v16  ;;  %v3307_v28 = vadd.f32 %v3306_v23, %v752_v11  ;;  %v3308_v35 = vpop.f32.mrb[55].mxu0  ;;  %3580 = vst [vmem:[%s4964_s8 + $0x1b0] sm:$0xff] %v3346_v20  ;;  %v3350_v36 = vadd.f32 %v3349_v34, %v760_v12  ;;  %v3351_v37 = vpop.f32.mrb[55].mxu1 }
 0x234   : > { %3579 = vst [vmem:[%s4964_s8 + $0x1a8] sm:$0xff] %v3305_v22  ;;  %v3309_v41 = vadd.f32 %v3308_v35, %v756_v13  ;;  %3581 = vst [vmem:[%s4964_s8 + $0x1b8] sm:$0xff] %v3348_v24  ;;  %v3352_v38 = vadd.f32 %v3351_v37, %v764_v14 }
 0x235   : > { %3642 = vst [vmem:[%s4964_s8 + $0x3a0] sm:$0xff] %v3307_v28  ;;  %3644 = vst [vmem:[%s4964_s8 + $0x3b0] sm:$0xff] %v3350_v36 }
 0x236   : > { %3643 = vst [vmem:[%s4964_s8 + $0x3a8] sm:$0xff] %v3309_v41  ;;  %3645 = vst [vmem:[%s4964_s8 + $0x3b8] sm:$0xff] %v3352_v38 }
 0x240   : > { %v3388_v44 = vpop.f32.mrb[56].mxu0  ;;  %v3431_v46 = vpop.f32.mrb[56].mxu1 }
 0x241   : > { %v3389_v45 = vadd.f32 %v3388_v44, %v768_v18  ;;  %v3390_v47 = vpop.f32.mrb[57].mxu0  ;;  %v3432_v48 = vadd.f32 %v3431_v46, %v776_v40  ;;  %v3433_v50 = vpop.f32.mrb[57].mxu1 }
 0x242   : > { %v3391_v49 = vadd.f32 %v3390_v47, %v772_v42  ;;  %v3392_v25 = vpop.f32.mrb[58].mxu0  ;;  %v3434_v30 = vadd.f32 %v3433_v50, %v780_v43  ;;  %v3435_v31 = vpop.f32.mrb[58].mxu1 }
 0x243   : > { %3582 = vst [vmem:[%s4964_s8 + $0x1c0] sm:$0xff] %v3389_v45  ;;  %v3393_v51 = vadd.f32 %v3392_v25, %v768_v18  ;;  %v3394_v52 = vpop.f32.mrb[59].mxu0  ;;  %3584 = vst [vmem:[%s4964_s8 + $0x1d0] sm:$0xff] %v3432_v48  ;;  %v3436_v33 = vadd.f32 %v3435_v31, %v776_v40  ;;  %v3437_v54 = vpop.f32.mrb[59].mxu1 }
 0x244   : > { %3583 = vst [vmem:[%s4964_s8 + $0x1c8] sm:$0xff] %v3391_v49  ;;  %v3395_v53 = vadd.f32 %v3394_v52, %v772_v42  ;;  %3585 = vst [vmem:[%s4964_s8 + $0x1d8] sm:$0xff] %v3434_v30  ;;  %v3438_v29 = vadd.f32 %v3437_v54, %v780_v43 }
 0x245   : > { %3646 = vst [vmem:[%s4964_s8 + $0x3c0] sm:$0xff] %v3393_v51  ;;  %3648 = vst [vmem:[%s4964_s8 + $0x3d0] sm:$0xff] %v3436_v33 }
 0x246   : > { %3647 = vst [vmem:[%s4964_s8 + $0x3c8] sm:$0xff] %v3395_v53  ;;  %3649 = vst [vmem:[%s4964_s8 + $0x3d8] sm:$0xff] %v3438_v29 }
 0x250   : > { %v3474_v60 = vpop.f32.mrb[60].mxu0  ;;  %v3517_v62 = vpop.f32.mrb[60].mxu1 }
 0x251   : > { %v3475_v61 = vadd.f32 %v3474_v60, %v784_v55  ;;  %v3476_v63 = vpop.f32.mrb[61].mxu0  ;;  %v3518_v1 = vadd.f32 %v3517_v62, %v792_v56  ;;  %v3519_v2 = vpop.f32.mrb[61].mxu1 }
 0x252   : > { %v3477_v0 = vadd.f32 %v3476_v63, %v788_v57  ;;  %v3478_v21 = vpop.f32.mrb[62].mxu0  ;;  %v3520_v26 = vadd.f32 %v3519_v2, %v796_v58  ;;  %v3521_v32 = vpop.f32.mrb[62].mxu1 }
 0x253   : > { %3586 = vst [vmem:[%s4964_s8 + $0x1e0] sm:$0xff] %v3475_v61  ;;  %v3479_v27 = vadd.f32 %v3478_v21, %v784_v55  ;;  %v3480_v3 = vpop.f32.mrb[63].mxu0  ;;  %3588 = vst [vmem:[%s4964_s8 + $0x1f0] sm:$0xff] %v3518_v1  ;;  %v3522_v4 = vadd.f32 %v3521_v32, %v792_v56  ;;  %v3523_v6 = vpop.f32.mrb[63].mxu1 }
 0x254   : > { %3587 = vst [vmem:[%s4964_s8 + $0x1e8] sm:$0xff] %v3477_v0  ;;  %v3481_v5 = vadd.f32 %v3480_v3, %v788_v57  ;;  %3589 = vst [vmem:[%s4964_s8 + $0x1f8] sm:$0xff] %v3520_v26  ;;  %v3524_v7 = vadd.f32 %v3523_v6, %v796_v58 }
 0x255   : > { %3650 = vst [vmem:[%s4964_s8 + $0x3e0] sm:$0xff] %v3479_v27  ;;  %3652 = vst [vmem:[%s4964_s8 + $0x3f0] sm:$0xff] %v3522_v4 }
 0x256   : > { %3651 = vst [vmem:[%s4964_s8 + $0x3e8] sm:$0xff] %v3481_v5  ;;  %3653 = vst [vmem:[%s4964_s8 + $0x3f8] sm:$0xff] %v3524_v7 }
 0x257   : > { %4292 = shalt.err (!%p4289_p7)
}
 0x258   : > { %s4293_s18 = scalar_lea.hbm %s5201_s21, 16384  ;;  %s4297_s6 = scalar_lea.hbm %s5261_s3, 65536 }
 0x259   : > { %p4294_p9 = scmp.ne.s32.totalorder %s5201_s21, %s4293_s18  ;;  %p4298_p10 = scmp.lt.u32.totalorder %s5201_s21, %s5261_s3 }
 0x25a   : > { %p4299_p2 = scmp.lt.u32.totalorder %s4297_s6, %s4293_s18  ;;  %p4301_p3 = scmp.lt.u32.totalorder %s4293_s18, %s5201_s21 }
 0x25b   : > { %p4295_p12 = pnand %p4294_p9, %p5286_p5 }
 0x25c   : > { %p4300_p0 = por %p4299_p2, %p4298_p10 }
 0x25d   : > { %p4296_p6 = pneg %p4295_p12 }
 0x25e   : > { %p4302_p1 = por %p4301_p3, %p4300_p0 }
 0x260   : > { %p4303_p11 = pnand %p4302_p1, %p4296_p6 }
 0x262   : > { %4306 = shalt.err (!%p4303_p11)
}
 0x263   : > { %s4377_s30 = smov 8192   ;;  %s4378_s7 = smov 32768  }
 0x264   : > { %s4379_s8 = smov 512  }
 0x265   : > { %4110 = dma.vmem_to_hbm [thread:$0]  (%p5286_p5), %s5205_s27, 16384, %s5201_s21, %s3655_s23, %s4377_s30, %s4378_s7, %s4379_s8  }
 0x266 PF: > { %p4130_p13 = scmp.ge.s32.totalorder %s4365_s17, 2  ;;  %s3686_s25 = sand.u32 1, %s4345_s12  }
 0x267   : > { %p5287_p8 = scmp.ne.s32.totalorder %s5276_s4, 0  ;;  %s3687_s15 = scalar_lea.sflag [#allocation4], %s3686_s25 }
 0x269   : > { %p4124_p4 = pnand %p4130_p13, %p5287_p8 }
 0x26b   : > { %4340 = dma.done.wait (!%p4124_p4), %s3687_s15, 16384  }
 0x26c   : > { %4342 = vsyncadd (!%p4124_p4), %s3687_s15, 4294950912  ;;  %s20_s17 = sadd.s32 1, %s4365_s17   ;;  %s5288_s28 = sld [smem:[#allocation12_spill]] }
 0x26d   : > { %p17_p7 = scmp.ge.s32.totalorder %s20_s17, 6   ;;  %s5289_s12 = smov %s4349_s13 }
 0x26e   : > { %s5290_s13 = smov %s4353_s14  ;;  %s5291_s14 = smov %s4447_s24 }
 0x26f   : > { %s5292_s15 = smov %s4361_s16  ;;  %19 = sbr.rel (!%p17_p7) target bundleno = 9 (0x9), region = 94 }
 0x272   : > { %s5293_s16 = smov %s5288_s28 }
 0x276   :  { %3692 = vsyncpa [#allocation3], 1 }
 0x277   :  { %3694 = vsyncpa [#allocation3 + $0x1], 1 }
 0x278   :  { %3695 = vsyncpa [#allocation6], 1 }
 0x279   :  { %3697 = vsyncpa [#allocation6 + $0x1], 1 }
 0x27a   :  { %3698 = vsyncpa [#allocation4], 1 }
 0x27b   :  { %3700 = vsyncpa [#allocation4 + $0x1], 1 }

</bundles_post_ra>
